<compile_context>
chip_gen: v7x
topology: tpu7x:2x2x1
jax: 0.10.0
libtpu: 0.0.40
codegen_flags: <defaults>
</compile_context>

<pallas_src>
import functools

import jax
import jax.numpy as jnp
from jax.experimental import pallas as pl
from jax.experimental.pallas import tpu as pltpu


LRELU_BLOCK = 0.2   # 'lrelu' activation used inside the conv / res blocks
LRELU_MID = 0.1     # the explicit nn.LeakyReLU(0.1) before the head conv


def _leaky(x, slope):
    return jnp.where(x >= 0, x, x * slope)


def _make_kernel(cfg, img_h, img_w):
    ch0 = cfg["ch"]
    n_int = cfg["n_intermediates"]

    def conv3x3(x, w_ref, b_ref, m_ref, hh, ww):
        """3x3 conv (stride 1, zero pad 1) as ONE matmul on stacked roll-taps.

        x:     (Cin, hh*ww) f32 value (channels in sublanes, pixels in lanes).
        w_ref: (Cout, 9*Cin) VMEM ref; column t*Cin + i, t = 3*dh + dw, holds
               torch weight[:, i, dh, dw].
        b_ref: (Cout, 1) VMEM ref.
        m_ref: (9, hh*ww) VMEM ref of precomputed border masks (1 = in-bounds).
        Returns (Cout, hh*ww) f32.
        """
        hw = hh * ww
        taps = []
        for dh in range(3):
            for dw in range(3):
                t = 3 * dh + dw
                off = (dh - 1) * ww + (dw - 1)      # flat source offset of tap
                if off == 0:
                    taps.append(x)                   # center tap: always valid
                else:
                    # want tap[p] = x[p + off]  =>  roll shift = -off (mod hw)
                    tap = pltpu.roll(x, (-off) % hw, axis=1)
                    taps.append(tap * m_ref[t:t + 1, :])
        stacked = jnp.concatenate(taps, axis=0)      # (9*Cin, hw), sublane-concat
        return (jnp.dot(w_ref[...], stacked, preferred_element_type=jnp.float32)
                + b_ref[...])

    def kernel(dom_ref, *refs):
        # dom_ref: scalar-prefetched target-domain indices in SMEM.  The gather
        # itself is done by the fin_w/fin_b index_maps; kept for the contract.
        del dom_ref
        x_ref = refs[0]                 # (1, 3, H*W) block of flattened NCHW input
        fin_w_ref = refs[-4]            # (1, C, dim_style)   -- domain-sliced
        fin_b_ref = refs[-3]            # (1, 1, dim_style)   -- domain-sliced
        o_ref = refs[-2]                # (1, 1, dim_style) output block
        flat_ref = refs[-1]             # (1, C*act_hw) VMEM scratch (head flatten)
        it = iter(refs[1:-4])           # weights / biases / masks / pool matrices

        # ---- stem: Conv2dBlock(3, ch, 1, 1, 0, 'none', 'none') == 1x1 conv ----
        w0, b0 = next(it), next(it)
        h = jnp.dot(w0[...], x_ref[0], preferred_element_type=jnp.float32) + b0[...]

        hh, ww, c = img_h, img_w, ch0
        for i in range(n_int):
            if i < n_int - 1:
                # ResBlockPreActivationWithAvgPool(c, 2c):
                #   pool( conv2(act(conv1(act(x)))) + conv1x1(x) )
                w1, b1, w2, b2, wsc, bsc, msk, pmat = (next(it) for _ in range(8))
                r = conv3x3(_leaky(h, LRELU_BLOCK), w1, b1, msk, hh, ww)
                r = conv3x3(_leaky(r, LRELU_BLOCK), w2, b2, msk, hh, ww)
                sc = (jnp.dot(wsc[...], h, preferred_element_type=jnp.float32)
                      + bsc[...])
                h = jnp.dot(r + sc, pmat[...], preferred_element_type=jnp.float32)
                c *= 2
            else:
                # ResBlockPreActivation(c) followed by nn.AvgPool2d(2):
                #   pool( x + conv2(act(conv1(act(x)))) )
                w1, b1, w2, b2, msk, pmat = (next(it) for _ in range(6))
                r = conv3x3(_leaky(h, LRELU_BLOCK), w1, b1, msk, hh, ww)
                r = conv3x3(_leaky(r, LRELU_BLOCK), w2, b2, msk, hh, ww)
                h = jnp.dot(h + r, pmat[...], preferred_element_type=jnp.float32)
            hh //= 2
            ww //= 2

        # ---- nn.LeakyReLU(0.1) ----
        h = _leaky(h, LRELU_MID)                               # (c, hh*ww)

        # ---- head: Conv2dBlock(c, c, act_h, 1, 0, 'none', 'lrelu') ----
        # Kernel covers the whole remaining map -> dense layer over c*hh*ww.
        # Flatten (c, hw) -> (1, c*hw) through a tiny VMEM scratch (static row
        # stores: robust, no in-register reshape), then ONE matmul.
        hw = hh * ww
        for ci in range(c):
            flat_ref[0:1, ci * hw:(ci + 1) * hw] = h[ci:ci + 1, :]
        wh, bh = next(it), next(it)                            # (c*hw, c), (1, c)
        hrow = _leaky(
            jnp.dot(flat_ref[...], wh[...], preferred_element_type=jnp.float32)
            + bh[...], LRELU_BLOCK)                            # (1, c)

        # ---- final Conv2dBlock + gather_domain, fused via scalar prefetch ----
        # fin_w/fin_b were already sliced to the target domain by their
        # index_maps, so this computes only the dim_style target columns.
        o_ref[0] = (jnp.dot(hrow, fin_w_ref[0], preferred_element_type=jnp.float32)
                    + fin_b_ref[0])

    return kernel


# ----------------------------------------------------------------------------
# Host-side helpers: pooling matrices, border masks, parameter init, wrapper.
# ----------------------------------------------------------------------------
def _avgpool2_matrix(h, w):
    """(H*W, H/2*W/2) matrix so that (C, H*W) @ P == 2x2 average pooling."""
    wo = w // 2
    src = jnp.arange(h * w)
    dst = (src // w // 2) * wo + (src % w) // 2
    return 0.25 * (dst[:, None] == jnp.arange((h // 2) * wo)[None, :]).astype(jnp.float32)


def _border_masks(h, w):
    """(9, H*W) f32 masks: mask[3*dh+dw, p] = 1 iff tap (dh-1, dw-1) of output
    pixel p reads an in-bounds input pixel (zero-padding otherwise)."""
    pos = jnp.arange(h * w)
    row, col = pos // w, pos % w
    ms = []
    for dh in range(3):
        for dw in range(3):
            rr, cc = row + dh - 1, col + dw - 1
            valid = (rr >= 0) & (rr < h) & (cc >= 0) & (cc < w)
            ms.append(valid.astype(jnp.float32))
    return jnp.stack(ms, axis=0)


def init_style_encoder(key, cfg):
    """Deterministic synthetic parameters, already in the kernel's layouts.

    Layout mapping from torch weights:
      3x3 conv:  w[o, t*Cin + i] == torch_W[o, i, dh, dw], t = 3*dh + dw
      head conv: w[ci*act_hw + p, o] == torch_W[o, ci, ph, pw], p = ph*W + pw
      final 1x1: w[d, ci, s] == torch_W[d*dim_style + s, ci, 0, 0]
    """
    ch = cfg["ch"]
    n_int = cfg["n_intermediates"]
    nd, ds = cfg["num_domain"], cfg["dim_style"]
    act_hw = (cfg["img_size"] // (2 ** n_int)) ** 2

    def dense(k, shape, scale=0.05):
        return scale * jax.random.normal(k, shape, jnp.float32)

    keys = iter(jax.random.split(key, 40))
    params = {"stem_w": dense(next(keys), (ch, 3)),          # (Cout, Cin)
              "stem_b": dense(next(keys), (ch, 1))}
    c = ch
    for i in range(n_int):
        if i < n_int - 1:
            o = 2 * c
            params[f"res{i}"] = {
                "c1_w": dense(next(keys), (o, 9 * c)), "c1_b": dense(next(keys), (o, 1)),
                "c2_w": dense(next(keys), (o, 9 * o)), "c2_b": dense(next(keys), (o, 1)),
                "sc_w": dense(next(keys), (o, c)),     "sc_b": dense(next(keys), (o, 1)),
            }
            c = o
        else:
            params[f"res{i}"] = {
                "c1_w": dense(next(keys), (c, 9 * c)), "c1_b": dense(next(keys), (c, 1)),
                "c2_w": dense(next(keys), (c, 9 * c)), "c2_b": dense(next(keys), (c, 1)),
            }
    params["head_w"] = dense(next(keys), (c * act_hw, c))
    params["head_b"] = dense(next(keys), (1, c))
    params["fin_w"] = dense(next(keys), (nd, c, ds))
    params["fin_b"] = dense(next(keys), (nd, 1, ds))
    return params


def _flatten_operands(params, masks, pools, cfg):
    n_int = cfg["n_intermediates"]
    ops = [params["stem_w"], params["stem_b"]]
    for i in range(n_int):
        blk = params[f"res{i}"]
        ops += [blk["c1_w"], blk["c1_b"], blk["c2_w"], blk["c2_b"]]
        if i < n_int - 1:
            ops += [blk["sc_w"], blk["sc_b"]]
        ops += [masks[i], pools[i]]
    ops += [params["head_w"], params["head_b"]]
    return ops


def style_encoder_forward(params, x_nchw, target_domain, cfg):
    """x_nchw: (N, 3, H, W) f32 (PyTorch layout). target_domain: N ints, any shape."""
    n, cin, h, w = x_nchw.shape
    ds = cfg["dim_style"]
    n_int = cfg["n_intermediates"]
    c_fin = cfg["ch"] * (2 ** (n_int - 1))
    act_hw = (h // 2 ** n_int) * (w // 2 ** n_int)

    masks, pools, ph, pw = [], [], h, w
    for _ in range(n_int):
        masks.append(_border_masks(ph, pw))
        pools.append(_avgpool2_matrix(ph, pw))
        ph //= 2
        pw //= 2

    ops = _flatten_operands(params, masks, pools, cfg)
    fin_w, fin_b = params["fin_w"], params["fin_b"]

    x_flat = x_nchw.reshape(n, cin, h * w).astype(jnp.float32)   # channels-major, lane-dense
    dom = target_domain.reshape(n).astype(jnp.int32)

    def full_spec(a):
        zero = (0,) * a.ndim
        return pl.BlockSpec(a.shape, lambda b, d: zero)          # fetched once, reused per step

    grid_spec = pltpu.PrefetchScalarGridSpec(
        num_scalar_prefetch=1,                                   # target domain -> SMEM
        grid=(n,),                                               # one sample per grid step
        in_specs=[pl.BlockSpec((1, cin, h * w), lambda b, d: (b, 0, 0))]
        + [full_spec(a) for a in ops]
        + [pl.BlockSpec((1, c_fin, ds), lambda b, d: (d[b], 0, 0)),   # domain-sliced weight
           pl.BlockSpec((1, 1, ds), lambda b, d: (d[b], 0, 0))],      # domain-sliced bias
        out_specs=pl.BlockSpec((1, 1, ds), lambda b, d: (b, 0, 0)),
        scratch_shapes=[pltpu.VMEM((1, c_fin * act_hw), jnp.float32)],  # head flatten buffer
    )
    return pl.pallas_call(
        _make_kernel(cfg, h, w),
        out_shape=jax.ShapeDtypeStruct((n, 1, ds), jnp.float32),
        grid_spec=grid_spec,
        compiler_params=pltpu.CompilerParams(
            dimension_semantics=("parallel",),                   # v7x: one sample per TensorCore
            vmem_limit_bytes=32 * 1024 * 1024,
        ),
    )(dom, x_flat, *ops, fin_w, fin_b)


# ----------------------------------------------------------------------------
if __name__ == "__main__":
    cfg = {
        "ch": 8,
        "n_intermediates": 2,
        "activation": "lrelu",
        "output_dim": 8,      # dim_style
        "dim_style": 8,
        "num_domain": 3,
        "img_size": 16,
    }

    key = jax.random.PRNGKey(0)
    k_param, k_x = jax.random.split(key)
    params = init_style_encoder(k_param, cfg)

    # PyTorch-convention NCHW input; the kernel keeps the channels-major layout.
    x = jax.random.normal(k_x, (2, 3, cfg["img_size"], cfg["img_size"]), jnp.float32)
    target_domain = jnp.array([[[1]], [[2]]], dtype=jnp.int32)   # (N, 1, 1), as in the torch module

    fwd = jax.jit(functools.partial(style_encoder_forward, cfg=cfg))
    out = jax.block_until_ready(fwd(params, x, target_domain))

    assert out.shape == (2, 1, cfg["dim_style"]), out.shape
    assert out.dtype == jnp.float32
    assert bool(jnp.all(jnp.isfinite(out)))
    print("KERNEL_OK")
</pallas_src>

<mosaic_0001>
module attributes {stable_mosaic.version = 11 : i64} {
  func.func @kernel(%arg0: i32, %arg1: memref<2xi32, #tpu.memory_space<smem>>, %arg2: memref<1x3x256xf32, #tpu.memory_space<vmem>>, %arg3: memref<8x3xf32, #tpu.memory_space<vmem>>, %arg4: memref<8x1xf32, #tpu.memory_space<vmem>>, %arg5: memref<16x72xf32, #tpu.memory_space<vmem>>, %arg6: memref<16x1xf32, #tpu.memory_space<vmem>>, %arg7: memref<16x144xf32, #tpu.memory_space<vmem>>, %arg8: memref<16x1xf32, #tpu.memory_space<vmem>>, %arg9: memref<16x8xf32, #tpu.memory_space<vmem>>, %arg10: memref<16x1xf32, #tpu.memory_space<vmem>>, %arg11: memref<9x256xf32, #tpu.memory_space<vmem>>, %arg12: memref<256x64xf32, #tpu.memory_space<vmem>>, %arg13: memref<16x144xf32, #tpu.memory_space<vmem>>, %arg14: memref<16x1xf32, #tpu.memory_space<vmem>>, %arg15: memref<16x144xf32, #tpu.memory_space<vmem>>, %arg16: memref<16x1xf32, #tpu.memory_space<vmem>>, %arg17: memref<9x64xf32, #tpu.memory_space<vmem>>, %arg18: memref<64x16xf32, #tpu.memory_space<vmem>>, %arg19: memref<256x16xf32, #tpu.memory_space<vmem>>, %arg20: memref<1x16xf32, #tpu.memory_space<vmem>>, %arg21: memref<1x16x8xf32, #tpu.memory_space<vmem>>, %arg22: memref<1x1x8xf32, #tpu.memory_space<vmem>>, %arg23: memref<1x1x8xf32, #tpu.memory_space<vmem>>, %arg24: memref<1x256xf32, #tpu.memory_space<vmem>>) attributes {dimension_semantics = [#tpu.dimension_semantics<parallel>], iteration_bounds = array<i64: 2>, scalar_prefetch = 1 : i64, scratch_operands = 1 : i64, tpu.core_type = #tpu.core_type<tc>, window_params = [{transform_indices = @transform_0, window_bounds = array<i64: 1, 3, 256>}, {pipeline_mode = #tpu.pipeline_mode<synchronous>, transform_indices = @transform_1, window_bounds = array<i64: 8, 3>}, {pipeline_mode = #tpu.pipeline_mode<synchronous>, transform_indices = @transform_2, window_bounds = array<i64: 8, 1>}, {pipeline_mode = #tpu.pipeline_mode<synchronous>, transform_indices = @transform_3, window_bounds = array<i64: 16, 72>}, {pipeline_mode = #tpu.pipeline_mode<synchronous>, transform_indices = @transform_4, window_bounds = array<i64: 16, 1>}, {pipeline_mode = #tpu.pipeline_mode<synchronous>, transform_indices = @transform_5, window_bounds = array<i64: 16, 144>}, {pipeline_mode = #tpu.pipeline_mode<synchronous>, transform_indices = @transform_6, window_bounds = array<i64: 16, 1>}, {pipeline_mode = #tpu.pipeline_mode<synchronous>, transform_indices = @transform_7, window_bounds = array<i64: 16, 8>}, {pipeline_mode = #tpu.pipeline_mode<synchronous>, transform_indices = @transform_8, window_bounds = array<i64: 16, 1>}, {pipeline_mode = #tpu.pipeline_mode<synchronous>, transform_indices = @transform_9, window_bounds = array<i64: 9, 256>}, {pipeline_mode = #tpu.pipeline_mode<synchronous>, transform_indices = @transform_10, window_bounds = array<i64: 256, 64>}, {pipeline_mode = #tpu.pipeline_mode<synchronous>, transform_indices = @transform_11, window_bounds = array<i64: 16, 144>}, {pipeline_mode = #tpu.pipeline_mode<synchronous>, transform_indices = @transform_12, window_bounds = array<i64: 16, 1>}, {pipeline_mode = #tpu.pipeline_mode<synchronous>, transform_indices = @transform_13, window_bounds = array<i64: 16, 144>}, {pipeline_mode = #tpu.pipeline_mode<synchronous>, transform_indices = @transform_14, window_bounds = array<i64: 16, 1>}, {pipeline_mode = #tpu.pipeline_mode<synchronous>, transform_indices = @transform_15, window_bounds = array<i64: 9, 64>}, {pipeline_mode = #tpu.pipeline_mode<synchronous>, transform_indices = @transform_16, window_bounds = array<i64: 64, 16>}, {pipeline_mode = #tpu.pipeline_mode<synchronous>, transform_indices = @transform_17, window_bounds = array<i64: 256, 16>}, {pipeline_mode = #tpu.pipeline_mode<synchronous>, transform_indices = @transform_18, window_bounds = array<i64: 1, 16>}, {transform_indices = @transform_19, window_bounds = array<i64: 1, 16, 8>}, {transform_indices = @transform_20, window_bounds = array<i64: 1, 1, 8>}, {transform_indices = @transform_21, window_bounds = array<i64: 1, 1, 8>}]} {
    %c0 = arith.constant 0 : index
    %c0_0 = arith.constant 0 : index
    %0 = vector.load %arg3[%c0, %c0_0] : memref<8x3xf32, #tpu.memory_space<vmem>>, vector<8x3xf32>
    %c0_1 = arith.constant 0 : index
    %c0_2 = arith.constant 0 : index
    %c0_3 = arith.constant 0 : index
    %1 = vector.load %arg2[%c0_1, %c0_2, %c0_3] : memref<1x3x256xf32, #tpu.memory_space<vmem>>, vector<1x3x256xf32>
    %2 = vector.shape_cast %1 : vector<1x3x256xf32> to vector<3x256xf32>
    %cst = arith.constant dense<0.000000e+00> : vector<8x256xf32>
    %3 = tpu.matmul %0, %2, %cst {dimension_numbers = #tpu.dot_dimension_numbers<[1], [0], [0], [1], [0, 0, 1, 1], [], []>} : vector<8x3xf32>, vector<3x256xf32>, vector<8x256xf32> -> vector<8x256xf32>
    %c0_4 = arith.constant 0 : index
    %c0_5 = arith.constant 0 : index
    %4 = vector.load %arg4[%c0_4, %c0_5] : memref<8x1xf32, #tpu.memory_space<vmem>>, vector<8x1xf32>
    %5 = vector.broadcast %4 : vector<8x1xf32> to vector<8x256xf32>
    %6 = arith.addf %3, %5 : vector<8x256xf32>
    %cst_6 = arith.constant 0.000000e+00 : f32
    %7 = vector.broadcast %cst_6 : f32 to vector<8x256xf32>
    %8 = arith.cmpf oge, %6, %7 : vector<8x256xf32>
    %cst_7 = arith.constant 2.000000e-01 : f32
    %9 = vector.broadcast %cst_7 : f32 to vector<8x256xf32>
    %10 = arith.mulf %6, %9 : vector<8x256xf32>
    %11 = arith.select %8, %6, %10 : vector<8x256xi1>, vector<8x256xf32>
    %c17_i32 = arith.constant 17 : i32
    %12 = tpu.dynamic_rotate %11 by %c17_i32 dim 1 : vector<8x256xf32>, i32 -> vector<8x256xf32>
    %c0_8 = arith.constant 0 : index
    %c0_9 = arith.constant 0 : index
    %13 = vector.load %arg11[%c0_8, %c0_9] : memref<9x256xf32, #tpu.memory_space<vmem>>, vector<1x256xf32>
    %14 = vector.broadcast %13 : vector<1x256xf32> to vector<8x256xf32>
    %15 = arith.mulf %12, %14 : vector<8x256xf32>
    %c16_i32 = arith.constant 16 : i32
    %16 = tpu.dynamic_rotate %11 by %c16_i32 dim 1 : vector<8x256xf32>, i32 -> vector<8x256xf32>
    %c1 = arith.constant 1 : index
    %c0_10 = arith.constant 0 : index
    %17 = vector.load %arg11[%c1, %c0_10] : memref<9x256xf32, #tpu.memory_space<vmem>>, vector<1x256xf32>
    %18 = vector.broadcast %17 : vector<1x256xf32> to vector<8x256xf32>
    %19 = arith.mulf %16, %18 : vector<8x256xf32>
    %c15_i32 = arith.constant 15 : i32
    %20 = tpu.dynamic_rotate %11 by %c15_i32 dim 1 : vector<8x256xf32>, i32 -> vector<8x256xf32>
    %c2 = arith.constant 2 : index
    %c0_11 = arith.constant 0 : index
    %21 = vector.load %arg11[%c2, %c0_11] : memref<9x256xf32, #tpu.memory_space<vmem>>, vector<1x256xf32>
    %22 = vector.broadcast %21 : vector<1x256xf32> to vector<8x256xf32>
    %23 = arith.mulf %20, %22 : vector<8x256xf32>
    %c1_i32 = arith.constant 1 : i32
    %24 = tpu.dynamic_rotate %11 by %c1_i32 dim 1 : vector<8x256xf32>, i32 -> vector<8x256xf32>
    %c3 = arith.constant 3 : index
    %c0_12 = arith.constant 0 : index
    %25 = vector.load %arg11[%c3, %c0_12] : memref<9x256xf32, #tpu.memory_space<vmem>>, vector<1x256xf32>
    %26 = vector.broadcast %25 : vector<1x256xf32> to vector<8x256xf32>
    %27 = arith.mulf %24, %26 : vector<8x256xf32>
    %c255_i32 = arith.constant 255 : i32
    %28 = tpu.dynamic_rotate %11 by %c255_i32 dim 1 : vector<8x256xf32>, i32 -> vector<8x256xf32>
    %c5 = arith.constant 5 : index
    %c0_13 = arith.constant 0 : index
    %29 = vector.load %arg11[%c5, %c0_13] : memref<9x256xf32, #tpu.memory_space<vmem>>, vector<1x256xf32>
    %30 = vector.broadcast %29 : vector<1x256xf32> to vector<8x256xf32>
    %31 = arith.mulf %28, %30 : vector<8x256xf32>
    %c241_i32 = arith.constant 241 : i32
    %32 = tpu.dynamic_rotate %11 by %c241_i32 dim 1 : vector<8x256xf32>, i32 -> vector<8x256xf32>
    %c6 = arith.constant 6 : index
    %c0_14 = arith.constant 0 : index
    %33 = vector.load %arg11[%c6, %c0_14] : memref<9x256xf32, #tpu.memory_space<vmem>>, vector<1x256xf32>
    %34 = vector.broadcast %33 : vector<1x256xf32> to vector<8x256xf32>
    %35 = arith.mulf %32, %34 : vector<8x256xf32>
    %c240_i32 = arith.constant 240 : i32
    %36 = tpu.dynamic_rotate %11 by %c240_i32 dim 1 : vector<8x256xf32>, i32 -> vector<8x256xf32>
    %c7 = arith.constant 7 : index
    %c0_15 = arith.constant 0 : index
    %37 = vector.load %arg11[%c7, %c0_15] : memref<9x256xf32, #tpu.memory_space<vmem>>, vector<1x256xf32>
    %38 = vector.broadcast %37 : vector<1x256xf32> to vector<8x256xf32>
    %39 = arith.mulf %36, %38 : vector<8x256xf32>
    %c239_i32 = arith.constant 239 : i32
    %40 = tpu.dynamic_rotate %11 by %c239_i32 dim 1 : vector<8x256xf32>, i32 -> vector<8x256xf32>
    %c8 = arith.constant 8 : index
    %c0_16 = arith.constant 0 : index
    %41 = vector.load %arg11[%c8, %c0_16] : memref<9x256xf32, #tpu.memory_space<vmem>>, vector<1x256xf32>
    %42 = vector.broadcast %41 : vector<1x256xf32> to vector<8x256xf32>
    %43 = arith.mulf %40, %42 : vector<8x256xf32>
    %44 = tpu.concatenate %15, %19, %23, %27, %11, %31, %35, %39, %43 in 0 : vector<8x256xf32>, vector<8x256xf32>, vector<8x256xf32>, vector<8x256xf32>, vector<8x256xf32>, vector<8x256xf32>, vector<8x256xf32>, vector<8x256xf32>, vector<8x256xf32> -> vector<72x256xf32>
    %c0_17 = arith.constant 0 : index
    %c0_18 = arith.constant 0 : index
    %45 = vector.load %arg5[%c0_17, %c0_18] : memref<16x72xf32, #tpu.memory_space<vmem>>, vector<16x72xf32>
    %cst_19 = arith.constant dense<0.000000e+00> : vector<16x256xf32>
    %46 = tpu.matmul %45, %44, %cst_19 {dimension_numbers = #tpu.dot_dimension_numbers<[1], [0], [0], [1], [0, 0, 1, 1], [], []>} : vector<16x72xf32>, vector<72x256xf32>, vector<16x256xf32> -> vector<16x256xf32>
    %c0_20 = arith.constant 0 : index
    %c0_21 = arith.constant 0 : index
    %47 = vector.load %arg6[%c0_20, %c0_21] : memref<16x1xf32, #tpu.memory_space<vmem>>, vector<16x1xf32>
    %48 = vector.broadcast %47 : vector<16x1xf32> to vector<16x256xf32>
    %49 = arith.addf %46, %48 : vector<16x256xf32>
    %cst_22 = arith.constant 0.000000e+00 : f32
    %50 = vector.broadcast %cst_22 : f32 to vector<16x256xf32>
    %51 = arith.cmpf oge, %49, %50 : vector<16x256xf32>
    %cst_23 = arith.constant 2.000000e-01 : f32
    %52 = vector.broadcast %cst_23 : f32 to vector<16x256xf32>
    %53 = arith.mulf %49, %52 : vector<16x256xf32>
    %54 = arith.select %51, %49, %53 : vector<16x256xi1>, vector<16x256xf32>
    %c17_i32_24 = arith.constant 17 : i32
    %55 = tpu.dynamic_rotate %54 by %c17_i32_24 dim 1 : vector<16x256xf32>, i32 -> vector<16x256xf32>
    %c0_25 = arith.constant 0 : index
    %c0_26 = arith.constant 0 : index
    %56 = vector.load %arg11[%c0_25, %c0_26] : memref<9x256xf32, #tpu.memory_space<vmem>>, vector<1x256xf32>
    %57 = vector.broadcast %56 : vector<1x256xf32> to vector<16x256xf32>
    %58 = arith.mulf %55, %57 : vector<16x256xf32>
    %c16_i32_27 = arith.constant 16 : i32
    %59 = tpu.dynamic_rotate %54 by %c16_i32_27 dim 1 : vector<16x256xf32>, i32 -> vector<16x256xf32>
    %c1_28 = arith.constant 1 : index
    %c0_29 = arith.constant 0 : index
    %60 = vector.load %arg11[%c1_28, %c0_29] : memref<9x256xf32, #tpu.memory_space<vmem>>, vector<1x256xf32>
    %61 = vector.broadcast %60 : vector<1x256xf32> to vector<16x256xf32>
    %62 = arith.mulf %59, %61 : vector<16x256xf32>
    %c15_i32_30 = arith.constant 15 : i32
    %63 = tpu.dynamic_rotate %54 by %c15_i32_30 dim 1 : vector<16x256xf32>, i32 -> vector<16x256xf32>
    %c2_31 = arith.constant 2 : index
    %c0_32 = arith.constant 0 : index
    %64 = vector.load %arg11[%c2_31, %c0_32] : memref<9x256xf32, #tpu.memory_space<vmem>>, vector<1x256xf32>
    %65 = vector.broadcast %64 : vector<1x256xf32> to vector<16x256xf32>
    %66 = arith.mulf %63, %65 : vector<16x256xf32>
    %c1_i32_33 = arith.constant 1 : i32
    %67 = tpu.dynamic_rotate %54 by %c1_i32_33 dim 1 : vector<16x256xf32>, i32 -> vector<16x256xf32>
    %c3_34 = arith.constant 3 : index
    %c0_35 = arith.constant 0 : index
    %68 = vector.load %arg11[%c3_34, %c0_35] : memref<9x256xf32, #tpu.memory_space<vmem>>, vector<1x256xf32>
    %69 = vector.broadcast %68 : vector<1x256xf32> to vector<16x256xf32>
    %70 = arith.mulf %67, %69 : vector<16x256xf32>
    %c255_i32_36 = arith.constant 255 : i32
    %71 = tpu.dynamic_rotate %54 by %c255_i32_36 dim 1 : vector<16x256xf32>, i32 -> vector<16x256xf32>
    %c5_37 = arith.constant 5 : index
    %c0_38 = arith.constant 0 : index
    %72 = vector.load %arg11[%c5_37, %c0_38] : memref<9x256xf32, #tpu.memory_space<vmem>>, vector<1x256xf32>
    %73 = vector.broadcast %72 : vector<1x256xf32> to vector<16x256xf32>
    %74 = arith.mulf %71, %73 : vector<16x256xf32>
    %c241_i32_39 = arith.constant 241 : i32
    %75 = tpu.dynamic_rotate %54 by %c241_i32_39 dim 1 : vector<16x256xf32>, i32 -> vector<16x256xf32>
    %c6_40 = arith.constant 6 : index
    %c0_41 = arith.constant 0 : index
    %76 = vector.load %arg11[%c6_40, %c0_41] : memref<9x256xf32, #tpu.memory_space<vmem>>, vector<1x256xf32>
    %77 = vector.broadcast %76 : vector<1x256xf32> to vector<16x256xf32>
    %78 = arith.mulf %75, %77 : vector<16x256xf32>
    %c240_i32_42 = arith.constant 240 : i32
    %79 = tpu.dynamic_rotate %54 by %c240_i32_42 dim 1 : vector<16x256xf32>, i32 -> vector<16x256xf32>
    %c7_43 = arith.constant 7 : index
    %c0_44 = arith.constant 0 : index
    %80 = vector.load %arg11[%c7_43, %c0_44] : memref<9x256xf32, #tpu.memory_space<vmem>>, vector<1x256xf32>
    %81 = vector.broadcast %80 : vector<1x256xf32> to vector<16x256xf32>
    %82 = arith.mulf %79, %81 : vector<16x256xf32>
    %c239_i32_45 = arith.constant 239 : i32
    %83 = tpu.dynamic_rotate %54 by %c239_i32_45 dim 1 : vector<16x256xf32>, i32 -> vector<16x256xf32>
    %c8_46 = arith.constant 8 : index
    %c0_47 = arith.constant 0 : index
    %84 = vector.load %arg11[%c8_46, %c0_47] : memref<9x256xf32, #tpu.memory_space<vmem>>, vector<1x256xf32>
    %85 = vector.broadcast %84 : vector<1x256xf32> to vector<16x256xf32>
    %86 = arith.mulf %83, %85 : vector<16x256xf32>
    %87 = tpu.concatenate %58, %62, %66, %70, %54, %74, %78, %82, %86 in 0 : vector<16x256xf32>, vector<16x256xf32>, vector<16x256xf32>, vector<16x256xf32>, vector<16x256xf32>, vector<16x256xf32>, vector<16x256xf32>, vector<16x256xf32>, vector<16x256xf32> -> vector<144x256xf32>
    %c0_48 = arith.constant 0 : index
    %c0_49 = arith.constant 0 : index
    %88 = vector.load %arg7[%c0_48, %c0_49] : memref<16x144xf32, #tpu.memory_space<vmem>>, vector<16x144xf32>
    %cst_50 = arith.constant dense<0.000000e+00> : vector<16x256xf32>
    %89 = tpu.matmul %88, %87, %cst_50 {dimension_numbers = #tpu.dot_dimension_numbers<[1], [0], [0], [1], [0, 0, 1, 1], [], []>} : vector<16x144xf32>, vector<144x256xf32>, vector<16x256xf32> -> vector<16x256xf32>
    %c0_51 = arith.constant 0 : index
    %c0_52 = arith.constant 0 : index
    %90 = vector.load %arg8[%c0_51, %c0_52] : memref<16x1xf32, #tpu.memory_space<vmem>>, vector<16x1xf32>
    %91 = vector.broadcast %90 : vector<16x1xf32> to vector<16x256xf32>
    %92 = arith.addf %89, %91 : vector<16x256xf32>
    %c0_53 = arith.constant 0 : index
    %c0_54 = arith.constant 0 : index
    %93 = vector.load %arg9[%c0_53, %c0_54] : memref<16x8xf32, #tpu.memory_space<vmem>>, vector<16x8xf32>
    %cst_55 = arith.constant dense<0.000000e+00> : vector<16x256xf32>
    %94 = tpu.matmul %93, %6, %cst_55 {dimension_numbers = #tpu.dot_dimension_numbers<[1], [0], [0], [1], [0, 0, 1, 1], [], []>} : vector<16x8xf32>, vector<8x256xf32>, vector<16x256xf32> -> vector<16x256xf32>
    %c0_56 = arith.constant 0 : index
    %c0_57 = arith.constant 0 : index
    %95 = vector.load %arg10[%c0_56, %c0_57] : memref<16x1xf32, #tpu.memory_space<vmem>>, vector<16x1xf32>
    %96 = vector.broadcast %95 : vector<16x1xf32> to vector<16x256xf32>
    %97 = arith.addf %94, %96 : vector<16x256xf32>
    %98 = arith.addf %92, %97 : vector<16x256xf32>
    %c0_58 = arith.constant 0 : index
    %c0_59 = arith.constant 0 : index
    %99 = vector.load %arg12[%c0_58, %c0_59] : memref<256x64xf32, #tpu.memory_space<vmem>>, vector<256x64xf32>
    %cst_60 = arith.constant dense<0.000000e+00> : vector<16x64xf32>
    %100 = tpu.matmul %98, %99, %cst_60 {dimension_numbers = #tpu.dot_dimension_numbers<[1], [0], [0], [1], [0, 0, 1, 1], [], []>} : vector<16x256xf32>, vector<256x64xf32>, vector<16x64xf32> -> vector<16x64xf32>
    %cst_61 = arith.constant 0.000000e+00 : f32
    %101 = vector.broadcast %cst_61 : f32 to vector<16x64xf32>
    %102 = arith.cmpf oge, %100, %101 : vector<16x64xf32>
    %cst_62 = arith.constant 2.000000e-01 : f32
    %103 = vector.broadcast %cst_62 : f32 to vector<16x64xf32>
    %104 = arith.mulf %100, %103 : vector<16x64xf32>
    %105 = arith.select %102, %100, %104 : vector<16x64xi1>, vector<16x64xf32>
    %c9_i32 = arith.constant 9 : i32
    %106 = tpu.dynamic_rotate %105 by %c9_i32 dim 1 : vector<16x64xf32>, i32 -> vector<16x64xf32>
    %c0_63 = arith.constant 0 : index
    %c0_64 = arith.constant 0 : index
    %107 = vector.load %arg17[%c0_63, %c0_64] : memref<9x64xf32, #tpu.memory_space<vmem>>, vector<1x64xf32>
    %108 = vector.broadcast %107 : vector<1x64xf32> to vector<16x64xf32>
    %109 = arith.mulf %106, %108 : vector<16x64xf32>
    %c8_i32 = arith.constant 8 : i32
    %110 = tpu.dynamic_rotate %105 by %c8_i32 dim 1 : vector<16x64xf32>, i32 -> vector<16x64xf32>
    %c1_65 = arith.constant 1 : index
    %c0_66 = arith.constant 0 : index
    %111 = vector.load %arg17[%c1_65, %c0_66] : memref<9x64xf32, #tpu.memory_space<vmem>>, vector<1x64xf32>
    %112 = vector.broadcast %111 : vector<1x64xf32> to vector<16x64xf32>
    %113 = arith.mulf %110, %112 : vector<16x64xf32>
    %c7_i32 = arith.constant 7 : i32
    %114 = tpu.dynamic_rotate %105 by %c7_i32 dim 1 : vector<16x64xf32>, i32 -> vector<16x64xf32>
    %c2_67 = arith.constant 2 : index
    %c0_68 = arith.constant 0 : index
    %115 = vector.load %arg17[%c2_67, %c0_68] : memref<9x64xf32, #tpu.memory_space<vmem>>, vector<1x64xf32>
    %116 = vector.broadcast %115 : vector<1x64xf32> to vector<16x64xf32>
    %117 = arith.mulf %114, %116 : vector<16x64xf32>
    %c1_i32_69 = arith.constant 1 : i32
    %118 = tpu.dynamic_rotate %105 by %c1_i32_69 dim 1 : vector<16x64xf32>, i32 -> vector<16x64xf32>
    %c3_70 = arith.constant 3 : index
    %c0_71 = arith.constant 0 : index
    %119 = vector.load %arg17[%c3_70, %c0_71] : memref<9x64xf32, #tpu.memory_space<vmem>>, vector<1x64xf32>
    %120 = vector.broadcast %119 : vector<1x64xf32> to vector<16x64xf32>
    %121 = arith.mulf %118, %120 : vector<16x64xf32>
    %c63_i32 = arith.constant 63 : i32
    %122 = tpu.dynamic_rotate %105 by %c63_i32 dim 1 : vector<16x64xf32>, i32 -> vector<16x64xf32>
    %c5_72 = arith.constant 5 : index
    %c0_73 = arith.constant 0 : index
    %123 = vector.load %arg17[%c5_72, %c0_73] : memref<9x64xf32, #tpu.memory_space<vmem>>, vector<1x64xf32>
    %124 = vector.broadcast %123 : vector<1x64xf32> to vector<16x64xf32>
    %125 = arith.mulf %122, %124 : vector<16x64xf32>
    %c57_i32 = arith.constant 57 : i32
    %126 = tpu.dynamic_rotate %105 by %c57_i32 dim 1 : vector<16x64xf32>, i32 -> vector<16x64xf32>
    %c6_74 = arith.constant 6 : index
    %c0_75 = arith.constant 0 : index
    %127 = vector.load %arg17[%c6_74, %c0_75] : memref<9x64xf32, #tpu.memory_space<vmem>>, vector<1x64xf32>
    %128 = vector.broadcast %127 : vector<1x64xf32> to vector<16x64xf32>
    %129 = arith.mulf %126, %128 : vector<16x64xf32>
    %c56_i32 = arith.constant 56 : i32
    %130 = tpu.dynamic_rotate %105 by %c56_i32 dim 1 : vector<16x64xf32>, i32 -> vector<16x64xf32>
    %c7_76 = arith.constant 7 : index
    %c0_77 = arith.constant 0 : index
    %131 = vector.load %arg17[%c7_76, %c0_77] : memref<9x64xf32, #tpu.memory_space<vmem>>, vector<1x64xf32>
    %132 = vector.broadcast %131 : vector<1x64xf32> to vector<16x64xf32>
    %133 = arith.mulf %130, %132 : vector<16x64xf32>
    %c55_i32 = arith.constant 55 : i32
    %134 = tpu.dynamic_rotate %105 by %c55_i32 dim 1 : vector<16x64xf32>, i32 -> vector<16x64xf32>
    %c8_78 = arith.constant 8 : index
    %c0_79 = arith.constant 0 : index
    %135 = vector.load %arg17[%c8_78, %c0_79] : memref<9x64xf32, #tpu.memory_space<vmem>>, vector<1x64xf32>
    %136 = vector.broadcast %135 : vector<1x64xf32> to vector<16x64xf32>
    %137 = arith.mulf %134, %136 : vector<16x64xf32>
    %138 = tpu.concatenate %109, %113, %117, %121, %105, %125, %129, %133, %137 in 0 : vector<16x64xf32>, vector<16x64xf32>, vector<16x64xf32>, vector<16x64xf32>, vector<16x64xf32>, vector<16x64xf32>, vector<16x64xf32>, vector<16x64xf32>, vector<16x64xf32> -> vector<144x64xf32>
    %c0_80 = arith.constant 0 : index
    %c0_81 = arith.constant 0 : index
    %139 = vector.load %arg13[%c0_80, %c0_81] : memref<16x144xf32, #tpu.memory_space<vmem>>, vector<16x144xf32>
    %cst_82 = arith.constant dense<0.000000e+00> : vector<16x64xf32>
    %140 = tpu.matmul %139, %138, %cst_82 {dimension_numbers = #tpu.dot_dimension_numbers<[1], [0], [0], [1], [0, 0, 1, 1], [], []>} : vector<16x144xf32>, vector<144x64xf32>, vector<16x64xf32> -> vector<16x64xf32>
    %c0_83 = arith.constant 0 : index
    %c0_84 = arith.constant 0 : index
    %141 = vector.load %arg14[%c0_83, %c0_84] : memref<16x1xf32, #tpu.memory_space<vmem>>, vector<16x1xf32>
    %142 = vector.broadcast %141 : vector<16x1xf32> to vector<16x64xf32>
    %143 = arith.addf %140, %142 : vector<16x64xf32>
    %cst_85 = arith.constant 0.000000e+00 : f32
    %144 = vector.broadcast %cst_85 : f32 to vector<16x64xf32>
    %145 = arith.cmpf oge, %143, %144 : vector<16x64xf32>
    %cst_86 = arith.constant 2.000000e-01 : f32
    %146 = vector.broadcast %cst_86 : f32 to vector<16x64xf32>
    %147 = arith.mulf %143, %146 : vector<16x64xf32>
    %148 = arith.select %145, %143, %147 : vector<16x64xi1>, vector<16x64xf32>
    %c9_i32_87 = arith.constant 9 : i32
    %149 = tpu.dynamic_rotate %148 by %c9_i32_87 dim 1 : vector<16x64xf32>, i32 -> vector<16x64xf32>
    %c0_88 = arith.constant 0 : index
    %c0_89 = arith.constant 0 : index
    %150 = vector.load %arg17[%c0_88, %c0_89] : memref<9x64xf32, #tpu.memory_space<vmem>>, vector<1x64xf32>
    %151 = vector.broadcast %150 : vector<1x64xf32> to vector<16x64xf32>
    %152 = arith.mulf %149, %151 : vector<16x64xf32>
    %c8_i32_90 = arith.constant 8 : i32
    %153 = tpu.dynamic_rotate %148 by %c8_i32_90 dim 1 : vector<16x64xf32>, i32 -> vector<16x64xf32>
    %c1_91 = arith.constant 1 : index
    %c0_92 = arith.constant 0 : index
    %154 = vector.load %arg17[%c1_91, %c0_92] : memref<9x64xf32, #tpu.memory_space<vmem>>, vector<1x64xf32>
    %155 = vector.broadcast %154 : vector<1x64xf32> to vector<16x64xf32>
    %156 = arith.mulf %153, %155 : vector<16x64xf32>
    %c7_i32_93 = arith.constant 7 : i32
    %157 = tpu.dynamic_rotate %148 by %c7_i32_93 dim 1 : vector<16x64xf32>, i32 -> vector<16x64xf32>
    %c2_94 = arith.constant 2 : index
    %c0_95 = arith.constant 0 : index
    %158 = vector.load %arg17[%c2_94, %c0_95] : memref<9x64xf32, #tpu.memory_space<vmem>>, vector<1x64xf32>
    %159 = vector.broadcast %158 : vector<1x64xf32> to vector<16x64xf32>
    %160 = arith.mulf %157, %159 : vector<16x64xf32>
    %c1_i32_96 = arith.constant 1 : i32
    %161 = tpu.dynamic_rotate %148 by %c1_i32_96 dim 1 : vector<16x64xf32>, i32 -> vector<16x64xf32>
    %c3_97 = arith.constant 3 : index
    %c0_98 = arith.constant 0 : index
    %162 = vector.load %arg17[%c3_97, %c0_98] : memref<9x64xf32, #tpu.memory_space<vmem>>, vector<1x64xf32>
    %163 = vector.broadcast %162 : vector<1x64xf32> to vector<16x64xf32>
    %164 = arith.mulf %161, %163 : vector<16x64xf32>
    %c63_i32_99 = arith.constant 63 : i32
    %165 = tpu.dynamic_rotate %148 by %c63_i32_99 dim 1 : vector<16x64xf32>, i32 -> vector<16x64xf32>
    %c5_100 = arith.constant 5 : index
    %c0_101 = arith.constant 0 : index
    %166 = vector.load %arg17[%c5_100, %c0_101] : memref<9x64xf32, #tpu.memory_space<vmem>>, vector<1x64xf32>
    %167 = vector.broadcast %166 : vector<1x64xf32> to vector<16x64xf32>
    %168 = arith.mulf %165, %167 : vector<16x64xf32>
    %c57_i32_102 = arith.constant 57 : i32
    %169 = tpu.dynamic_rotate %148 by %c57_i32_102 dim 1 : vector<16x64xf32>, i32 -> vector<16x64xf32>
    %c6_103 = arith.constant 6 : index
    %c0_104 = arith.constant 0 : index
    %170 = vector.load %arg17[%c6_103, %c0_104] : memref<9x64xf32, #tpu.memory_space<vmem>>, vector<1x64xf32>
    %171 = vector.broadcast %170 : vector<1x64xf32> to vector<16x64xf32>
    %172 = arith.mulf %169, %171 : vector<16x64xf32>
    %c56_i32_105 = arith.constant 56 : i32
    %173 = tpu.dynamic_rotate %148 by %c56_i32_105 dim 1 : vector<16x64xf32>, i32 -> vector<16x64xf32>
    %c7_106 = arith.constant 7 : index
    %c0_107 = arith.constant 0 : index
    %174 = vector.load %arg17[%c7_106, %c0_107] : memref<9x64xf32, #tpu.memory_space<vmem>>, vector<1x64xf32>
    %175 = vector.broadcast %174 : vector<1x64xf32> to vector<16x64xf32>
    %176 = arith.mulf %173, %175 : vector<16x64xf32>
    %c55_i32_108 = arith.constant 55 : i32
    %177 = tpu.dynamic_rotate %148 by %c55_i32_108 dim 1 : vector<16x64xf32>, i32 -> vector<16x64xf32>
    %c8_109 = arith.constant 8 : index
    %c0_110 = arith.constant 0 : index
    %178 = vector.load %arg17[%c8_109, %c0_110] : memref<9x64xf32, #tpu.memory_space<vmem>>, vector<1x64xf32>
    %179 = vector.broadcast %178 : vector<1x64xf32> to vector<16x64xf32>
    %180 = arith.mulf %177, %179 : vector<16x64xf32>
    %181 = tpu.concatenate %152, %156, %160, %164, %148, %168, %172, %176, %180 in 0 : vector<16x64xf32>, vector<16x64xf32>, vector<16x64xf32>, vector<16x64xf32>, vector<16x64xf32>, vector<16x64xf32>, vector<16x64xf32>, vector<16x64xf32>, vector<16x64xf32> -> vector<144x64xf32>
    %c0_111 = arith.constant 0 : index
    %c0_112 = arith.constant 0 : index
    %182 = vector.load %arg15[%c0_111, %c0_112] : memref<16x144xf32, #tpu.memory_space<vmem>>, vector<16x144xf32>
    %cst_113 = arith.constant dense<0.000000e+00> : vector<16x64xf32>
    %183 = tpu.matmul %182, %181, %cst_113 {dimension_numbers = #tpu.dot_dimension_numbers<[1], [0], [0], [1], [0, 0, 1, 1], [], []>} : vector<16x144xf32>, vector<144x64xf32>, vector<16x64xf32> -> vector<16x64xf32>
    %c0_114 = arith.constant 0 : index
    %c0_115 = arith.constant 0 : index
    %184 = vector.load %arg16[%c0_114, %c0_115] : memref<16x1xf32, #tpu.memory_space<vmem>>, vector<16x1xf32>
    %185 = vector.broadcast %184 : vector<16x1xf32> to vector<16x64xf32>
    %186 = arith.addf %183, %185 : vector<16x64xf32>
    %187 = arith.addf %100, %186 : vector<16x64xf32>
    %c0_116 = arith.constant 0 : index
    %c0_117 = arith.constant 0 : index
    %188 = vector.load %arg18[%c0_116, %c0_117] : memref<64x16xf32, #tpu.memory_space<vmem>>, vector<64x16xf32>
    %cst_118 = arith.constant dense<0.000000e+00> : vector<16x16xf32>
    %189 = tpu.matmul %187, %188, %cst_118 {dimension_numbers = #tpu.dot_dimension_numbers<[1], [0], [0], [1], [0, 0, 1, 1], [], []>} : vector<16x64xf32>, vector<64x16xf32>, vector<16x16xf32> -> vector<16x16xf32>
    %cst_119 = arith.constant 0.000000e+00 : f32
    %190 = vector.broadcast %cst_119 : f32 to vector<16x16xf32>
    %191 = arith.cmpf oge, %189, %190 : vector<16x16xf32>
    %cst_120 = arith.constant 1.000000e-01 : f32
    %192 = vector.broadcast %cst_120 : f32 to vector<16x16xf32>
    %193 = arith.mulf %189, %192 : vector<16x16xf32>
    %194 = arith.select %191, %189, %193 : vector<16x16xi1>, vector<16x16xf32>
    %195 = vector.extract_strided_slice %194 {offsets = [0, 0], sizes = [1, 16], strides = [1, 1]} : vector<16x16xf32> to vector<1x16xf32>
    %c0_121 = arith.constant 0 : index
    %c0_122 = arith.constant 0 : index
    %196 = vector.load %arg24[%c0_121, %c0_122] : memref<1x256xf32, #tpu.memory_space<vmem>>, vector<1x16xf32>
    tpu.vector_store %arg24[%c0_121, %c0_122], %195 {strides = array<i32>} : memref<1x256xf32, #tpu.memory_space<vmem>>, vector<1x16xf32>,
    %197 = vector.extract_strided_slice %194 {offsets = [1, 0], sizes = [1, 16], strides = [1, 1]} : vector<16x16xf32> to vector<1x16xf32>
    %c0_123 = arith.constant 0 : index
    %c16 = arith.constant 16 : index
    %198 = vector.load %arg24[%c0_123, %c16] : memref<1x256xf32, #tpu.memory_space<vmem>>, vector<1x16xf32>
    tpu.vector_store %arg24[%c0_123, %c16], %197 {strides = array<i32>} : memref<1x256xf32, #tpu.memory_space<vmem>>, vector<1x16xf32>,
    %199 = vector.extract_strided_slice %194 {offsets = [2, 0], sizes = [1, 16], strides = [1, 1]} : vector<16x16xf32> to vector<1x16xf32>
    %c0_124 = arith.constant 0 : index
    %c32 = arith.constant 32 : index
    %200 = vector.load %arg24[%c0_124, %c32] : memref<1x256xf32, #tpu.memory_space<vmem>>, vector<1x16xf32>
    tpu.vector_store %arg24[%c0_124, %c32], %199 {strides = array<i32>} : memref<1x256xf32, #tpu.memory_space<vmem>>, vector<1x16xf32>,
    %201 = vector.extract_strided_slice %194 {offsets = [3, 0], sizes = [1, 16], strides = [1, 1]} : vector<16x16xf32> to vector<1x16xf32>
    %c0_125 = arith.constant 0 : index
    %c48 = arith.constant 48 : index
    %202 = vector.load %arg24[%c0_125, %c48] : memref<1x256xf32, #tpu.memory_space<vmem>>, vector<1x16xf32>
    tpu.vector_store %arg24[%c0_125, %c48], %201 {strides = array<i32>} : memref<1x256xf32, #tpu.memory_space<vmem>>, vector<1x16xf32>,
    %203 = vector.extract_strided_slice %194 {offsets = [4, 0], sizes = [1, 16], strides = [1, 1]} : vector<16x16xf32> to vector<1x16xf32>
    %c0_126 = arith.constant 0 : index
    %c64 = arith.constant 64 : index
    %204 = vector.load %arg24[%c0_126, %c64] : memref<1x256xf32, #tpu.memory_space<vmem>>, vector<1x16xf32>
    tpu.vector_store %arg24[%c0_126, %c64], %203 {strides = array<i32>} : memref<1x256xf32, #tpu.memory_space<vmem>>, vector<1x16xf32>,
    %205 = vector.extract_strided_slice %194 {offsets = [5, 0], sizes = [1, 16], strides = [1, 1]} : vector<16x16xf32> to vector<1x16xf32>
    %c0_127 = arith.constant 0 : index
    %c80 = arith.constant 80 : index
    %206 = vector.load %arg24[%c0_127, %c80] : memref<1x256xf32, #tpu.memory_space<vmem>>, vector<1x16xf32>
    tpu.vector_store %arg24[%c0_127, %c80], %205 {strides = array<i32>} : memref<1x256xf32, #tpu.memory_space<vmem>>, vector<1x16xf32>,
    %207 = vector.extract_strided_slice %194 {offsets = [6, 0], sizes = [1, 16], strides = [1, 1]} : vector<16x16xf32> to vector<1x16xf32>
    %c0_128 = arith.constant 0 : index
    %c96 = arith.constant 96 : index
    %208 = vector.load %arg24[%c0_128, %c96] : memref<1x256xf32, #tpu.memory_space<vmem>>, vector<1x16xf32>
    tpu.vector_store %arg24[%c0_128, %c96], %207 {strides = array<i32>} : memref<1x256xf32, #tpu.memory_space<vmem>>, vector<1x16xf32>,
    %209 = vector.extract_strided_slice %194 {offsets = [7, 0], sizes = [1, 16], strides = [1, 1]} : vector<16x16xf32> to vector<1x16xf32>
    %c0_129 = arith.constant 0 : index
    %c112 = arith.constant 112 : index
    %210 = vector.load %arg24[%c0_129, %c112] : memref<1x256xf32, #tpu.memory_space<vmem>>, vector<1x16xf32>
    tpu.vector_store %arg24[%c0_129, %c112], %209 {strides = array<i32>} : memref<1x256xf32, #tpu.memory_space<vmem>>, vector<1x16xf32>,
    %211 = vector.extract_strided_slice %194 {offsets = [8, 0], sizes = [1, 16], strides = [1, 1]} : vector<16x16xf32> to vector<1x16xf32>
    %c0_130 = arith.constant 0 : index
    %c128 = arith.constant 128 : index
    %212 = vector.load %arg24[%c0_130, %c128] : memref<1x256xf32, #tpu.memory_space<vmem>>, vector<1x16xf32>
    tpu.vector_store %arg24[%c0_130, %c128], %211 {strides = array<i32>} : memref<1x256xf32, #tpu.memory_space<vmem>>, vector<1x16xf32>,
    %213 = vector.extract_strided_slice %194 {offsets = [9, 0], sizes = [1, 16], strides = [1, 1]} : vector<16x16xf32> to vector<1x16xf32>
    %c0_131 = arith.constant 0 : index
    %c144 = arith.constant 144 : index
    %214 = vector.load %arg24[%c0_131, %c144] : memref<1x256xf32, #tpu.memory_space<vmem>>, vector<1x16xf32>
    tpu.vector_store %arg24[%c0_131, %c144], %213 {strides = array<i32>} : memref<1x256xf32, #tpu.memory_space<vmem>>, vector<1x16xf32>,
    %215 = vector.extract_strided_slice %194 {offsets = [10, 0], sizes = [1, 16], strides = [1, 1]} : vector<16x16xf32> to vector<1x16xf32>
    %c0_132 = arith.constant 0 : index
    %c160 = arith.constant 160 : index
    %216 = vector.load %arg24[%c0_132, %c160] : memref<1x256xf32, #tpu.memory_space<vmem>>, vector<1x16xf32>
    tpu.vector_store %arg24[%c0_132, %c160], %215 {strides = array<i32>} : memref<1x256xf32, #tpu.memory_space<vmem>>, vector<1x16xf32>,
    %217 = vector.extract_strided_slice %194 {offsets = [11, 0], sizes = [1, 16], strides = [1, 1]} : vector<16x16xf32> to vector<1x16xf32>
    %c0_133 = arith.constant 0 : index
    %c176 = arith.constant 176 : index
    %218 = vector.load %arg24[%c0_133, %c176] : memref<1x256xf32, #tpu.memory_space<vmem>>, vector<1x16xf32>
    tpu.vector_store %arg24[%c0_133, %c176], %217 {strides = array<i32>} : memref<1x256xf32, #tpu.memory_space<vmem>>, vector<1x16xf32>,
    %219 = vector.extract_strided_slice %194 {offsets = [12, 0], sizes = [1, 16], strides = [1, 1]} : vector<16x16xf32> to vector<1x16xf32>
    %c0_134 = arith.constant 0 : index
    %c192 = arith.constant 192 : index
    %220 = vector.load %arg24[%c0_134, %c192] : memref<1x256xf32, #tpu.memory_space<vmem>>, vector<1x16xf32>
    tpu.vector_store %arg24[%c0_134, %c192], %219 {strides = array<i32>} : memref<1x256xf32, #tpu.memory_space<vmem>>, vector<1x16xf32>,
    %221 = vector.extract_strided_slice %194 {offsets = [13, 0], sizes = [1, 16], strides = [1, 1]} : vector<16x16xf32> to vector<1x16xf32>
    %c0_135 = arith.constant 0 : index
    %c208 = arith.constant 208 : index
    %222 = vector.load %arg24[%c0_135, %c208] : memref<1x256xf32, #tpu.memory_space<vmem>>, vector<1x16xf32>
    tpu.vector_store %arg24[%c0_135, %c208], %221 {strides = array<i32>} : memref<1x256xf32, #tpu.memory_space<vmem>>, vector<1x16xf32>,
    %223 = vector.extract_strided_slice %194 {offsets = [14, 0], sizes = [1, 16], strides = [1, 1]} : vector<16x16xf32> to vector<1x16xf32>
    %c0_136 = arith.constant 0 : index
    %c224 = arith.constant 224 : index
    %224 = vector.load %arg24[%c0_136, %c224] : memref<1x256xf32, #tpu.memory_space<vmem>>, vector<1x16xf32>
    tpu.vector_store %arg24[%c0_136, %c224], %223 {strides = array<i32>} : memref<1x256xf32, #tpu.memory_space<vmem>>, vector<1x16xf32>,
    %225 = vector.extract_strided_slice %194 {offsets = [15, 0], sizes = [1, 16], strides = [1, 1]} : vector<16x16xf32> to vector<1x16xf32>
    %c0_137 = arith.constant 0 : index
    %c240 = arith.constant 240 : index
    %226 = vector.load %arg24[%c0_137, %c240] : memref<1x256xf32, #tpu.memory_space<vmem>>, vector<1x16xf32>
    tpu.vector_store %arg24[%c0_137, %c240], %225 {strides = array<i32>} : memref<1x256xf32, #tpu.memory_space<vmem>>, vector<1x16xf32>,
    %c0_138 = arith.constant 0 : index
    %c0_139 = arith.constant 0 : index
    %227 = vector.load %arg24[%c0_138, %c0_139] : memref<1x256xf32, #tpu.memory_space<vmem>>, vector<1x256xf32>
    %c0_140 = arith.constant 0 : index
    %c0_141 = arith.constant 0 : index
    %228 = vector.load %arg19[%c0_140, %c0_141] : memref<256x16xf32, #tpu.memory_space<vmem>>, vector<256x16xf32>
    %cst_142 = arith.constant dense<0.000000e+00> : vector<1x16xf32>
    %229 = tpu.matmul %227, %228, %cst_142 {dimension_numbers = #tpu.dot_dimension_numbers<[1], [0], [0], [1], [0, 0, 1, 1], [], []>} : vector<1x256xf32>, vector<256x16xf32>, vector<1x16xf32> -> vector<1x16xf32>
    %c0_143 = arith.constant 0 : index
    %c0_144 = arith.constant 0 : index
    %230 = vector.load %arg20[%c0_143, %c0_144] : memref<1x16xf32, #tpu.memory_space<vmem>>, vector<1x16xf32>
    %231 = arith.addf %229, %230 : vector<1x16xf32>
    %cst_145 = arith.constant 0.000000e+00 : f32
    %232 = vector.broadcast %cst_145 : f32 to vector<1x16xf32>
    %233 = arith.cmpf oge, %231, %232 : vector<1x16xf32>
    %cst_146 = arith.constant 2.000000e-01 : f32
    %234 = vector.broadcast %cst_146 : f32 to vector<1x16xf32>
    %235 = arith.mulf %231, %234 : vector<1x16xf32>
    %236 = arith.select %233, %231, %235 : vector<1x16xi1>, vector<1x16xf32>
    %c0_147 = arith.constant 0 : index
    %c0_148 = arith.constant 0 : index
    %c0_149 = arith.constant 0 : index
    %237 = vector.load %arg21[%c0_147, %c0_148, %c0_149] : memref<1x16x8xf32, #tpu.memory_space<vmem>>, vector<1x16x8xf32>
    %238 = vector.shape_cast %237 : vector<1x16x8xf32> to vector<16x8xf32>
    %cst_150 = arith.constant dense<0.000000e+00> : vector<1x8xf32>
    %239 = tpu.matmul %236, %238, %cst_150 {dimension_numbers = #tpu.dot_dimension_numbers<[1], [0], [0], [1], [0, 0, 1, 1], [], []>} : vector<1x16xf32>, vector<16x8xf32>, vector<1x8xf32> -> vector<1x8xf32>
    %c0_151 = arith.constant 0 : index
    %c0_152 = arith.constant 0 : index
    %c0_153 = arith.constant 0 : index
    %240 = vector.load %arg22[%c0_151, %c0_152, %c0_153] : memref<1x1x8xf32, #tpu.memory_space<vmem>>, vector<1x1x8xf32>
    %241 = vector.shape_cast %240 : vector<1x1x8xf32> to vector<1x8xf32>
    %242 = arith.addf %239, %241 : vector<1x8xf32>
    %c0_154 = arith.constant 0 : index
    %c0_155 = arith.constant 0 : index
    %c0_156 = arith.constant 0 : index
    %243 = vector.load %arg23[%c0_154, %c0_155, %c0_156] : memref<1x1x8xf32, #tpu.memory_space<vmem>>, vector<1x1x8xf32>
    %244 = vector.shape_cast %243 : vector<1x1x8xf32> to vector<1x8xf32>
    %245 = vector.shape_cast %242 : vector<1x8xf32> to vector<1x1x8xf32>
    tpu.vector_store %arg23[%c0_154, %c0_155, %c0_156], %245 {strides = array<i32>} : memref<1x1x8xf32, #tpu.memory_space<vmem>>, vector<1x1x8xf32>,
    return
  }
  func.func @transform_0(%arg0: i32, %arg1: memref<2xi32, #tpu.memory_space<smem>>) -> (i32, i32, i32) {
    %c0_i32 = arith.constant 0 : i32
    %c0_i32_0 = arith.constant 0 : i32
    %c0_i32_1 = arith.constant 0 : i32
    return %arg0, %c0_i32, %c0_i32_0 : i32, i32, i32
  }
  func.func @transform_1(%arg0: i32, %arg1: memref<2xi32, #tpu.memory_space<smem>>) -> (i32, i32) {
    %c0_i32 = arith.constant 0 : i32
    %c0_i32_0 = arith.constant 0 : i32
    %c0_i32_1 = arith.constant 0 : i32
    return %c0_i32, %c0_i32_0 : i32, i32
  }
  func.func @transform_2(%arg0: i32, %arg1: memref<2xi32, #tpu.memory_space<smem>>) -> (i32, i32) {
    %c0_i32 = arith.constant 0 : i32
    %c0_i32_0 = arith.constant 0 : i32
    %c0_i32_1 = arith.constant 0 : i32
    return %c0_i32, %c0_i32_0 : i32, i32
  }
  func.func @transform_3(%arg0: i32, %arg1: memref<2xi32, #tpu.memory_space<smem>>) -> (i32, i32) {
    %c0_i32 = arith.constant 0 : i32
    %c0_i32_0 = arith.constant 0 : i32
    %c0_i32_1 = arith.constant 0 : i32
    return %c0_i32, %c0_i32_0 : i32, i32
  }
  func.func @transform_4(%arg0: i32, %arg1: memref<2xi32, #tpu.memory_space<smem>>) -> (i32, i32) {
    %c0_i32 = arith.constant 0 : i32
    %c0_i32_0 = arith.constant 0 : i32
    %c0_i32_1 = arith.constant 0 : i32
    return %c0_i32, %c0_i32_0 : i32, i32
  }
  func.func @transform_5(%arg0: i32, %arg1: memref<2xi32, #tpu.memory_space<smem>>) -> (i32, i32) {
    %c0_i32 = arith.constant 0 : i32
    %c0_i32_0 = arith.constant 0 : i32
    %c0_i32_1 = arith.constant 0 : i32
    return %c0_i32, %c0_i32_0 : i32, i32
  }
  func.func @transform_6(%arg0: i32, %arg1: memref<2xi32, #tpu.memory_space<smem>>) -> (i32, i32) {
    %c0_i32 = arith.constant 0 : i32
    %c0_i32_0 = arith.constant 0 : i32
    %c0_i32_1 = arith.constant 0 : i32
    return %c0_i32, %c0_i32_0 : i32, i32
  }
  func.func @transform_7(%arg0: i32, %arg1: memref<2xi32, #tpu.memory_space<smem>>) -> (i32, i32) {
    %c0_i32 = arith.constant 0 : i32
    %c0_i32_0 = arith.constant 0 : i32
    %c0_i32_1 = arith.constant 0 : i32
    return %c0_i32, %c0_i32_0 : i32, i32
  }
  func.func @transform_8(%arg0: i32, %arg1: memref<2xi32, #tpu.memory_space<smem>>) -> (i32, i32) {
    %c0_i32 = arith.constant 0 : i32
    %c0_i32_0 = arith.constant 0 : i32
    %c0_i32_1 = arith.constant 0 : i32
    return %c0_i32, %c0_i32_0 : i32, i32
  }
  func.func @transform_9(%arg0: i32, %arg1: memref<2xi32, #tpu.memory_space<smem>>) -> (i32, i32) {
    %c0_i32 = arith.constant 0 : i32
    %c0_i32_0 = arith.constant 0 : i32
    %c0_i32_1 = arith.constant 0 : i32
    return %c0_i32, %c0_i32_0 : i32, i32
  }
  func.func @transform_10(%arg0: i32, %arg1: memref<2xi32, #tpu.memory_space<smem>>) -> (i32, i32) {
    %c0_i32 = arith.constant 0 : i32
    %c0_i32_0 = arith.constant 0 : i32
    %c0_i32_1 = arith.constant 0 : i32
    return %c0_i32, %c0_i32_0 : i32, i32
  }
  func.func @transform_11(%arg0: i32, %arg1: memref<2xi32, #tpu.memory_space<smem>>) -> (i32, i32) {
    %c0_i32 = arith.constant 0 : i32
    %c0_i32_0 = arith.constant 0 : i32
    %c0_i32_1 = arith.constant 0 : i32
    return %c0_i32, %c0_i32_0 : i32, i32
  }
  func.func @transform_12(%arg0: i32, %arg1: memref<2xi32, #tpu.memory_space<smem>>) -> (i32, i32) {
    %c0_i32 = arith.constant 0 : i32
    %c0_i32_0 = arith.constant 0 : i32
    %c0_i32_1 = arith.constant 0 : i32
    return %c0_i32, %c0_i32_0 : i32, i32
  }
  func.func @transform_13(%arg0: i32, %arg1: memref<2xi32, #tpu.memory_space<smem>>) -> (i32, i32) {
    %c0_i32 = arith.constant 0 : i32
    %c0_i32_0 = arith.constant 0 : i32
    %c0_i32_1 = arith.constant 0 : i32
    return %c0_i32, %c0_i32_0 : i32, i32
  }
  func.func @transform_14(%arg0: i32, %arg1: memref<2xi32, #tpu.memory_space<smem>>) -> (i32, i32) {
    %c0_i32 = arith.constant 0 : i32
    %c0_i32_0 = arith.constant 0 : i32
    %c0_i32_1 = arith.constant 0 : i32
    return %c0_i32, %c0_i32_0 : i32, i32
  }
  func.func @transform_15(%arg0: i32, %arg1: memref<2xi32, #tpu.memory_space<smem>>) -> (i32, i32) {
    %c0_i32 = arith.constant 0 : i32
    %c0_i32_0 = arith.constant 0 : i32
    %c0_i32_1 = arith.constant 0 : i32
    return %c0_i32, %c0_i32_0 : i32, i32
  }
  func.func @transform_16(%arg0: i32, %arg1: memref<2xi32, #tpu.memory_space<smem>>) -> (i32, i32) {
    %c0_i32 = arith.constant 0 : i32
    %c0_i32_0 = arith.constant 0 : i32
    %c0_i32_1 = arith.constant 0 : i32
    return %c0_i32, %c0_i32_0 : i32, i32
  }
  func.func @transform_17(%arg0: i32, %arg1: memref<2xi32, #tpu.memory_space<smem>>) -> (i32, i32) {
    %c0_i32 = arith.constant 0 : i32
    %c0_i32_0 = arith.constant 0 : i32
    %c0_i32_1 = arith.constant 0 : i32
    return %c0_i32, %c0_i32_0 : i32, i32
  }
  func.func @transform_18(%arg0: i32, %arg1: memref<2xi32, #tpu.memory_space<smem>>) -> (i32, i32) {
    %c0_i32 = arith.constant 0 : i32
    %c0_i32_0 = arith.constant 0 : i32
    %c0_i32_1 = arith.constant 0 : i32
    return %c0_i32, %c0_i32_0 : i32, i32
  }
  func.func @transform_19(%arg0: i32, %arg1: memref<2xi32, #tpu.memory_space<smem>>) -> (i32, i32, i32) {
    %0 = arith.index_cast %arg0 : i32 to index
    %1 = memref.load %arg1[%0] : memref<2xi32, #tpu.memory_space<smem>>
    %c0_i32 = arith.constant 0 : i32
    %c0_i32_0 = arith.constant 0 : i32
    %c0_i32_1 = arith.constant 0 : i32
    return %1, %c0_i32, %c0_i32_0 : i32, i32, i32
  }
  func.func @transform_20(%arg0: i32, %arg1: memref<2xi32, #tpu.memory_space<smem>>) -> (i32, i32, i32) {
    %0 = arith.index_cast %arg0 : i32 to index
    %1 = memref.load %arg1[%0] : memref<2xi32, #tpu.memory_space<smem>>
    %c0_i32 = arith.constant 0 : i32
    %c0_i32_0 = arith.constant 0 : i32
    %c0_i32_1 = arith.constant 0 : i32
    return %1, %c0_i32, %c0_i32_0 : i32, i32, i32
  }
  func.func @transform_21(%arg0: i32, %arg1: memref<2xi32, #tpu.memory_space<smem>>) -> (i32, i32, i32) {
    %c0_i32 = arith.constant 0 : i32
    %c0_i32_0 = arith.constant 0 : i32
    %c0_i32_1 = arith.constant 0 : i32
    return %arg0, %c0_i32, %c0_i32_0 : i32, i32, i32
  }
}

</mosaic_0001>

<bundles_post_ra>
// kernel: style_encoder_forward.1
= control target key start
LH: loop header
LB: loop body
LE: loop exit
PB: predicated region body
PF: predicated region fallthrough
CT: control target
= control target key end

     0   :  { %s4505_s0 = inlined_call_operand.vmem [shape: s32[2], index: 0, kind: input, shape index: {}]   ;;  %s4506_s1 = inlined_call_operand.vmem [shape: f32[2,3,256], index: 1, kind: input, shape index: {}]   ;;  %s4507_s2 = inlined_call_operand.vmem [shape: f32[8,3], index: 2, kind: input, shape index: {}]   ;;  %s4508_s3 = inlined_call_operand.vmem [shape: f32[8,1], index: 3, kind: input, shape index: {}]   ;;  %s4509_s4 = inlined_call_operand.vmem [shape: f32[16,72], index: 4, kind: input, shape index: {}]   ;;  %s4510_s5 = inlined_call_operand.vmem [shape: f32[16,1], index: 5, kind: input, shape index: {}]   ;;  %s4511_s6 = inlined_call_operand.vmem [shape: f32[16,144], index: 6, kind: input, shape index: {}]   ;;  %s4512_s7 = inlined_call_operand.vmem [shape: f32[16,1], index: 7, kind: input, shape index: {}]   ;;  %s4513_s8 = inlined_call_operand.vmem [shape: f32[16,8], index: 8, kind: input, shape index: {}]   ;;  %s4514_s9 = inlined_call_operand.vmem [shape: f32[16,1], index: 9, kind: input, shape index: {}]   ;;  %s4515_s10 = inlined_call_operand.vmem [shape: f32[9,256], index: 10, kind: input, shape index: {}]   ;;  %s4516_s11 = inlined_call_operand.vmem [shape: f32[256,64], index: 11, kind: input, shape index: {}]   ;;  %s4517_s12 = inlined_call_operand.vmem [shape: f32[16,144], index: 12, kind: input, shape index: {}]   ;;  %s4518_s13 = inlined_call_operand.vmem [shape: f32[16,1], index: 13, kind: input, shape index: {}]   ;;  %s4519_s14 = inlined_call_operand.vmem [shape: f32[16,144], index: 14, kind: input, shape index: {}]   ;;  %s4520_s15 = inlined_call_operand.vmem [shape: f32[16,1], index: 15, kind: input, shape index: {}]   ;;  %s4521_s16 = inlined_call_operand.vmem [shape: f32[9,64], index: 16, kind: input, shape index: {}]   ;;  %s4522_s17 = inlined_call_operand.vmem [shape: f32[64,16], index: 17, kind: input, shape index: {}]   ;;  %s4523_s18 = inlined_call_operand.vmem [shape: f32[256,16], index: 18, kind: input, shape index: {}]   ;;  %s4524_s19 = inlined_call_operand.vmem [shape: f32[1,16], index: 19, kind: input, shape index: {}]   ;;  %s4525_s20 = inlined_call_operand.vmem [shape: f32[3,16,8], index: 20, kind: input, shape index: {}]   ;;  %s4526_s21 = inlined_call_operand.vmem [shape: f32[3,1,8], index: 21, kind: input, shape index: {}]   ;;  %s4527_s22 = inlined_call_operand.hbm [shape: f32[2,1,8], index: 22, kind: output, shape index: {}]  }
   0x1   :  { %4556 = sst [smem:[#allocation15_spill]] %s4505_s0 }
   0x2   :  { %4557 = sst [smem:[#allocation16_spill]] %s4506_s1  ;;  %s4566_s29 = sld [smem:[#allocation15_spill]] }
   0x3   :  { %4558 = sst [smem:[#allocation17_spill]] %s4507_s2 }
   0x4   :  { %4559 = sst [smem:[#allocation18_spill]] %s4508_s3 }
   0x5   :  { %4560 = sst [smem:[#allocation19_spill]] %s4509_s4 }
   0x6   :  { %4561 = sst [smem:[#allocation20_spill]] %s4510_s5 }
   0x7   :  { %4562 = sst [smem:[#allocation21_spill]] %s4511_s6 }
   0x8   :  { %4563 = sst [smem:[#allocation22_spill]] %s4512_s7 }
   0x9   :  { %4564 = sst [smem:[#allocation23_spill]] %s4515_s10 }
   0xa   :  { %4565 = sst [smem:[#allocation24_spill]] %s4519_s14  ;;  %s27_s14 = sshll.u32 %s4566_s29, 4  ;;  %s28_s14 = int_to_ptr.vmem [resolvable:$true] %s27_s14 }
   0xb   :  { %s3239_s30 = scalar_lea.vmem %s28_s14, 16  ;;  %p3244_p1 = scmp.lt.s32.totalorder %s28_s14, %s28_s14 }
   0xc   :  { %p3240_p0 = scmp.ne.s32.totalorder %s28_s14, %s3239_s30  ;;  %p3245_p2 = scmp.lt.s32.totalorder %s3239_s30, %s3239_s30 }
   0xe   :  { %p3246_p3 = por %p3245_p2, %p3244_p1 }
  0x10   :  { %p3247_p4 = pnand %p3246_p3, %p3240_p0 }
  0x12   :  { %3250 = shalt.err (!%p3247_p4)  }
  0x13   :  { %s3317_s4 = smov [#allocation4]  }
  0x14   :  { %30 = dma.vmem_to_smem %s28_s14, 16, %s3317_s4, [#allocation3] }
  0x15   :  { %3295 = dma.done.wait [#allocation3], 16 }
  0x16   :  { %3296 = vsyncadd [#allocation3], 4294967280 }
  0x17   :  { %32 = sfence }
  0x18   :  { %33 = vsyncpa [#allocation6], 0 }
  0x19   :  { %35 = vsyncpa [#allocation6 + $0x1], 0  ;;  %s3468_s0 = smov 0   ;;  %s3470_s23 = smov 0  }
  0x1a   :  { %s3472_s1 = smov 0   ;;  %s3474_s5 = smov 0  }
  0x1b LB: > { %4567 = sst [smem:[#allocation9_spill]] %s3303_s0  ;;  %s3489_s14 = sadd.s32 4294967295, %s3315_s5   ;;  %s3315_s5 = sphi %s3474_s5, %s4598_s5   ;;  %s3311_s1 = sphi %s3472_s1, %s4600_s1   ;;  %s3307_s23 = sphi %s3470_s23, %s4602_s23   ;;  %s3303_s0 = sphi %s3468_s0, %s4601_s0  }
  0x1c   : > { %4568 = sst [smem:[#allocation10_spill]] %s3311_s1  ;;  %s2638_s24 = sadd.s32 4294967294, %s3315_s5  }
  0x1d   : > { %4569 = sst [smem:[#allocation11_spill]] %s3315_s5  ;;  %s3493_s6 = sadd.s32 1, %s3315_s5  }
  0x1e   : > { %4570 = sst [smem:[#allocation12_spill]] %s3493_s6  ;;  %s508_s25 = sadd.s32 1, %s3311_s1 }
  0x1f   : > { %s505_s26 = ssub.s32 %s3315_s5, %s3493_s6  ;;  %p518_p5 = scmp.ne.s32.totalorder %s3311_s1, %s3307_s23 }
  0x20   : > { %p506_p6 = scmp.eq.s32.totalorder %s505_s26, 0  ;;  %p519_p7 = scmp.eq.s32.totalorder %s3489_s14, 1 }
  0x21   : > { %p524_p8 = scmp.ne.s32.totalorder %s3307_s23, %s3303_s0  ;;  %p525_p9 = scmp.eq.s32.totalorder %s2638_s24, 1 }
  0x22   : > { %s3504_s2 = scalar_select %p506_p6, %s3311_s1, %s508_s25  }
  0x23   : > { %p3506_p10 = por %p519_p7, %p518_p5  ;;  %p3510_p11 = por %p525_p9, %p524_p8 }
  0x24   : > { %4571 = sst [smem:[#allocation13_spill]] %s3504_s2  ;;  %p2641_p12 = scmp.ge.s32.totalorder %s3315_s5, 1 }
  0x25   : > { %s4573_s3 = scalar_select %p3510_p11, 1, 0 }
  0x26   : > { %p623_p13 = scmp.lt.s32.totalorder %s3315_s5, 3 }
  0x27   : > { %4574 = sst [smem:[#allocation14_spill]] %s4573_s3 }
  0x28   : > { %p624_p0 = pnand %p2641_p12, %p623_p13 }
  0x29   : > { %p692_p1 = scmp.lt.s32.totalorder (!%p624_p0), %s3489_s14, 1  ;;  %v3318_v0 = vmov (!%p624_p0), 0.0   ;;  %v3319_v1 = vmov (!%p624_p0), 0   ;;  %s4575_s30 = sld [smem:[#allocation18_spill]] (!%p624_p0)  ;;  %vm723_vm0 = vcmask (!%p624_p0), 1042432   ;;  %vm719_vm1 = vcmask (!%p624_p0), 23552  }
  0x2a   : > { %627 = sbr.rel (%p624_p0) target bundleno = 3539 (0xdd3), region = 104  ;;  %792 = vmatprep.mubr.f32.mxu0 (!%p624_p0), %v3318_v0  ;;  %3066 = vset.pattern.permute.xlu0 (!%p624_p0), %v3319_v1  ;;  %s4576_s2 = sld [smem:[#allocation16_spill]] (!%p624_p0)  ;;  %v809_v17 = vlaneseq (!%p624_p0)  ;;  %vm996_vm12 = vcmask (!%p624_p0), 588800  }
  0x2b   : > { %1067 = vmatprep.mubr.f32.mxu1 (!%p624_p0), %v3318_v0  ;;  %3067 = vset.pattern.permute.xlu1 (!%p624_p0), %v3319_v1  ;;  %s4577_s0 = sld [smem:[#allocation17_spill]] (!%p624_p0)  ;;  %s3322_s6 = smov (!%p624_p0), 15  }
  0x2c   : > { %s4543_s3 = smov (!%p624_p0), 127   ;;  %s4537_s28 = smov (!%p624_p0), 113   ;;  %v3582_v20 = vshrl.u32 (!%p624_p0), %v809_v17, 7  ;;  %v3585_v21 = vand.u32 (!%p624_p0), 127, %v809_v17 }
  0x2d   : > { %s4541_s29 = smov (!%p624_p0), 112   ;;  %s4578_s25 = sld [smem:[#allocation20_spill]] (!%p624_p0) }
  0x2e   : > { %v3588_v24 = vsub.s32 (!%p624_p0), 0, %v3582_v20  ;;  %v3591_v25 = vsub.s32 (!%p624_p0), 1, %v3582_v20  ;;  %s4579_s10 = sld [smem:[#allocation23_spill]] (!%p624_p0)  ;;  %vm832_vm4 = vcmp.lt.s32.totalorder (!%p624_p0), %v3585_v21, 16  ;;  %vm854_vm5 = vcmp.lt.s32.totalorder (!%p624_p0), %v3585_v21, 15  ;;  %s4583_s26 = smov (!%p624_p0), 113  }
  0x2f   : > { %v711_v2 = vld [vmem:[%s4575_s30] sm:$0xff] (!%p624_p0)  ;;  %s4539_s30 = smov (!%p624_p0), 111   ;;  %vm811_vm6 = vcmp.lt.s32.totalorder (!%p624_p0), %v3585_v21, 17  ;;  %vm876_vm7 = vcmp.lt.s32.totalorder (!%p624_p0), %v3585_v21, 1  ;;  %vm898_vm8 = vcmp.lt.s32.totalorder (!%p624_p0), %v3585_v21, 127  ;;  %vm920_vm9 = vcmp.lt.s32.totalorder (!%p624_p0), %v3585_v21, 113 }
  0x30   : > { %714 = vperm.xlu0 (!%p624_p0), %3066, %v711_v2   ;;  %vm942_vm10 = vcmp.lt.s32.totalorder (!%p624_p0), %v3585_v21, 112  ;;  %vm964_vm11 = vcmp.lt.s32.totalorder (!%p624_p0), %v3585_v21, 111  ;;  %s4587_s7 = sld [smem:[#allocation22_spill]] (!%p624_p0)  ;;  %s3340_s5 = smov (!%p624_p0), 48  }
  0x31   : > { %s693_s4 = scalar_select %p692_p1, %s3489_s14, 1  ;;  %v709_v5 = vld [vmem:[%s4577_s0] sm:$0xff] }
  0x32   : > { %s4547_s0 = smov 16  }
  0x33   : > { %s2680_s24 = sshll.u32 %s693_s4, 3  ;;  %v985_v15 = vld [vmem:[%s4578_s25 + $0x8] sm:$0xff]  ;;  %v984_v16 = vld [vmem:[%s4578_s25] sm:$0xff]  ;;  %s4581_s4 = smov 1  }
  0x34   : > { %s696_s1 = scalar_lea.vmem %s4576_s2, %s2680_s24  ;;  %s4545_s2 = smov 1   ;;  %v2649_v26 = vld [vmem:[%s4579_s10 + $0x1] ss:$8 sm:$0x3] }
  0x35   : > { %v710_v3 = vld [vmem:[%s696_s1] sm:$0x77]  ;;  %s3321_s1 = smov 17   ;;  %v2651_v27 = vld [vmem:[%s4579_s10 + $0x3] ss:$8 sm:$0x3]  ;;  %v3607_v32 = vrot.slane %v2649_v26, %v3591_v25  ;;  %v3610_v33 = vrot.slane %v2649_v26, %v3588_v24 }
  0x36   : > { %v718_v4 = vcombine.high %v710_v3, %v710_v3  ;;  %v814_v28 = vld [vmem:[%s4579_s10] ss:$8 sm:$0x3]  ;;  %v2650_v30 = vld [vmem:[%s4579_s10 + $0x2] ss:$8 sm:$0x3]  ;;  %v3623_v37 = vrot.slane %v2651_v27, %v3591_v25  ;;  %v3635_v41 = vrot.slane %v2651_v27, %v3588_v24 }
  0x37   : > { %v2652_v35 = vld [vmem:[%s4579_s10 + $0x5] ss:$8 sm:$0x3]  ;;  %v3626_v38 = vrot.slane %v814_v28, %v3591_v25  ;;  %v3629_v39 = vrot.slane %v814_v28, %v3588_v24  ;;  %v3632_v40 = vrot.slane %v2650_v30, %v3591_v25  ;;  %v3657_v55 = vrot.slane %v2650_v30, %v3588_v24  ;;  %v2655_v26 = vld [vmem:[%s4579_s10 + $0x10] ss:$8 sm:$0x3] }
  0x38   : > { %2646 = vmatprep.subr.msk.mxu0 %vm723_vm0, %v718_v4  ;;  %v3639_v44 = vrot.slane %v2652_v35, %v3591_v25  ;;  %v3664_v63 = vrot.slane %v2652_v35, %v3588_v24  ;;  %v3708_v35 = vrot.slane %v2655_v26, %v3591_v25  ;;  %s4582_s24 = smov 127   ;;  %s3335_s25 = smov 55  }
  0x39   : > { %2647 = vmatpush1.msk.msra.mxu0 %vm723_vm0, %v710_v3 }
  0x3a   : > { %2648 = vmatmul.mubr.msk.f32.vlgmr.msra.gmra.mrb[0].mxu0 %vm719_vm1, %v709_v5  ;;  %v2653_v5 = vld [vmem:[%s4579_s10 + $0x6] ss:$8 sm:$0x3]  ;;  %vm1236_vm1 = vcmask 130048  }
  0xaf   : > { %v715_v6 = vpop.permute.xlu0 %714 }
 0x10d   : > { %v794_v7 = vpop.f32.mrb[0].mxu0 }
 0x10e   : > { %v3529_v8 = vadd.f32 %v794_v7, %v715_v6  ;;  %v796_v9 = vpop.f32.mrb[1].mxu0  ;;  %v2654_v7 = vld [vmem:[%s4579_s10 + $0x7] ss:$8 sm:$0x3]  ;;  %s4552_s10 = smov 64  }
 0x10f   : > { %v3531_v10 = vadd.f32 %v796_v9, %v715_v6 }
 0x110   : > { %vm799_vm2 = vcmp.ge.f32.partialorder %v3529_v8, 0.0  ;;  %v801_v11 = vmul.f32 0.2, %v3529_v8 }
 0x111   : > { %v802_v13 = vmul.f32 0.2, %v3531_v10  ;;  %vm800_vm3 = vcmp.ge.f32.partialorder %v3531_v10, 0.0 }
 0x112   : > { %v3536_v12 = vsel %vm799_vm2, %v3529_v8, %v801_v11  ;;  %vm1334_vm2 = vcmask 64512  }
 0x113   : > { %828 = vrot.lane.b32.xlu1 %v3536_v12, %s4547_s0  ;;  %805 = vrot.lane.b32.xlu0 %v3536_v12, %s3321_s1  ;;  %v3545_v14 = vsel %vm800_vm3, %v3531_v10, %v802_v13 }
 0x117   : > { %850 = vrot.lane.b32.xlu1 %v3536_v12, %s3322_s6  ;;  %830 = vrot.lane.b32.xlu0 %v3545_v14, %s4547_s0 }
 0x11b   : > { %872 = vrot.lane.b32.xlu1 %v3536_v12, %s4545_s2  ;;  %852 = vrot.lane.b32.xlu0 %v3545_v14, %s3322_s6 }
 0x11f   : > { %807 = vrot.lane.b32.xlu1 %v3545_v14, %s3321_s1  ;;  %874 = vrot.lane.b32.xlu0 %v3545_v14, %s4545_s2  ;;  %s4580_s2 = sld [smem:[#allocation19_spill]] }
 0x123   : > { %894 = vrot.lane.b32.xlu1 %v3536_v12, %s4543_s3  ;;  %896 = vrot.lane.b32.xlu0 %v3545_v14, %s4543_s3  ;;  %s4586_s3 = sld [smem:[#allocation21_spill]] }
 0x127   : > { %916 = vrot.lane.b32.xlu1 %v3536_v12, %s4537_s28  ;;  %918 = vrot.lane.b32.xlu0 %v3545_v14, %s4537_s28  ;;  %s4554_s28 = smov 47  }
 0x129   : > { %v1223_v21 = vld [vmem:[%s4586_s3 + $0x18] sm:$0xff] }
 0x12b   : > { %938 = vrot.lane.b32.xlu1 %v3536_v12, %s4541_s29  ;;  %940 = vrot.lane.b32.xlu0 %v3545_v14, %s4541_s29  ;;  %s4584_s29 = smov 112  }
 0x12f   : > { %960 = vrot.lane.b32.xlu1 %v3536_v12, %s4539_s30  ;;  %962 = vrot.lane.b32.xlu0 %v3545_v14, %s4539_s30  ;;  %s4585_s30 = smov 111  }
 0x133   : > { %993 = vperm.xlu0 %3066, %v985_v15   ;;  %988 = vperm.xlu1 %3067, %v984_v16   ;;  %v3681_v15 = vrot.slane %v2653_v5, %v3588_v24  ;;  %v3684_v16 = vrot.slane %v2653_v5, %v3591_v25 }
 0x185   : > { %v829_v18 = vpop.permute.xlu1 %828  ;;  %v806_v19 = vpop.permute.xlu0 %805 }
 0x189   : > { %v851_v22 = vpop.permute.xlu1 %850  ;;  %v831_v23 = vpop.permute.xlu0 %830 }
 0x18a   : > { %v834_v34 = vsel %vm832_vm4, %v831_v23, %v829_v18  ;;  %v833_v36 = vsel %vm832_vm4, %v829_v18, %v831_v23  ;;  %v3692_v23 = vrot.slane %v2654_v7, %v3591_v25 }
 0x18b   : > { %v849_v45 = vmul.f32 %v3607_v32, %v833_v36  ;;  %v848_v46 = vmul.f32 %v3610_v33, %v834_v34 }
 0x18d   : > { %v873_v29 = vpop.permute.xlu1 %872  ;;  %v853_v31 = vpop.permute.xlu0 %852 }
 0x18e   : > { %v855_v47 = vsel %vm854_vm5, %v851_v22, %v853_v31  ;;  %v856_v56 = vsel %vm854_vm5, %v853_v31, %v851_v22  ;;  %v3689_v22 = vrot.slane %v2654_v7, %v3588_v24 }
 0x18f   : > { %v871_v57 = vmul.f32 %v3632_v40, %v855_v47  ;;  %v870_v6 = vmul.f32 %v3657_v55, %v856_v56  ;;  %v983_v56 = vld [vmem:[%s4580_s2 + $0x8] sm:$0xff] }
 0x191   : > { %v808_v42 = vpop.permute.xlu1 %807  ;;  %v875_v43 = vpop.permute.xlu0 %874 }
 0x192   : > { %v813_v48 = vsel %vm811_vm6, %v808_v42, %v806_v19  ;;  %v877_v49 = vsel %vm876_vm7, %v873_v29, %v875_v43  ;;  %v812_v50 = vsel %vm811_vm6, %v806_v19, %v808_v42  ;;  %v878_v51 = vsel %vm876_vm7, %v875_v43, %v873_v29 }
 0x193   : > { %v893_v52 = vmul.f32 %v3623_v37, %v877_v49  ;;  %v827_v53 = vmul.f32 %v3626_v38, %v812_v50  ;;  %v826_v54 = vmul.f32 %v3629_v39, %v813_v48  ;;  %v892_v62 = vmul.f32 %v3635_v41, %v878_v51 }
 0x195   : > { %v895_v58 = vpop.permute.xlu1 %894  ;;  %v897_v59 = vpop.permute.xlu0 %896  ;;  %v2794_v60 = vpack.c.bf16 %v849_v45, %v827_v53  ;;  %v2796_v61 = vpack.c.bf16 %v848_v46, %v826_v54  ;;  %v2798_v4 = vpack.c.bf16 %v893_v52, %v871_v57  ;;  %v2800_v18 = vpack.c.bf16 %v892_v62, %v870_v6  ;;  %v982_v54 = vld [vmem:[%s4580_s2] sm:$0xff]  ;;  %s3331_s2 = smov 57  }
 0x196   : > { %v900_v1 = vsel %vm898_vm8, %v897_v59, %v895_v58  ;;  %v899_v2 = vsel %vm898_vm8, %v895_v58, %v897_v59 }
 0x197   : > { %v915_v3 = vmul.f32 %v3639_v44, %v900_v1  ;;  %2795 = vmatprep.subr.bf16.mxu1 %v2794_v60  ;;  %v914_v13 = vmul.f32 %v3664_v63, %v899_v2 }
 0x198   : > { %2797 = vmatpush1.bf16.msra.mxu1 %v2796_v61 }
 0x199   : > { %v917_v9 = vpop.permute.xlu1 %916  ;;  %2799 = vmatprep.subr.bf16.mxu1 %v2798_v4  ;;  %v919_v11 = vpop.permute.xlu0 %918  ;;  %v2802_v19 = vpack.c.bf16 %v915_v3, %v3545_v14  ;;  %v2804_v34 = vpack.c.bf16 %v914_v13, %v3536_v12  ;;  %v3717_v12 = vrot.slane %v2655_v26, %v3588_v24 }
 0x19a   : > { %v921_v27 = vsel %vm920_vm9, %v917_v9, %v919_v11  ;;  %v922_v28 = vsel %vm920_vm9, %v919_v11, %v917_v9 }
 0x19b   : > { %v936_v36 = vmul.f32 %v3681_v15, %v921_v27  ;;  %v937_v42 = vmul.f32 %v3684_v16, %v922_v28  ;;  %v1221_v28 = vld [vmem:[%s4586_s3 + $0x8] sm:$0xff] }
 0x19c   : > { %2801 = vmatpush1.bf16.msra.mxu1 %v2800_v18  ;;  %2658 = vmatprep.mubr.msk.f32.mxu0 %vm1236_vm1, %v1221_v28  ;;  %v1448_v28 = vld [vmem:[%s4516_s11 + $0xd0] sm:$0xff] }
 0x19d   : > { %v939_v14 = vpop.permute.xlu1 %938  ;;  %2803 = vmatprep.subr.bf16.mxu1 %v2802_v19  ;;  %v941_v29 = vpop.permute.xlu0 %940 }
 0x19e   : > { %v943_v30 = vsel %vm942_vm10, %v939_v14, %v941_v29  ;;  %v944_v31 = vsel %vm942_vm10, %v941_v29, %v939_v14  ;;  %v1224_v14 = vld [vmem:[%s4587_s7] sm:$0xff]  ;;  %v1225_v29 = vld [vmem:[%s4587_s7 + $0x8] sm:$0xff] }
 0x19f   : > { %v958_v43 = vmul.f32 %v3689_v22, %v943_v30  ;;  %v959_v45 = vmul.f32 %v3692_v23, %v944_v31  ;;  %v1322_v30 = vld [vmem:[%s4514_s9] sm:$0xff]  ;;  %v1323_v31 = vld [vmem:[%s4514_s9 + $0x8] sm:$0xff] }
 0x1a0   : > { %2805 = vmatpush1.bf16.msra.mxu1 %v2804_v34  ;;  %v1438_v34 = vld [vmem:[%s4516_s11 + $0x80] sm:$0xff] }
 0x1a1   : > { %v961_v46 = vpop.permute.xlu1 %960  ;;  %v963_v47 = vpop.permute.xlu0 %962  ;;  %v2806_v48 = vpack.c.bf16 %v959_v45, %v937_v42  ;;  %v2808_v49 = vpack.c.bf16 %v958_v43, %v936_v36  ;;  %v1439_v36 = vld [vmem:[%s4516_s11 + $0x88] sm:$0xff]  ;;  %v1422_v42 = vld [vmem:[%s4516_s11] sm:$0xff] }
 0x1a2   : > { %v966_v50 = vsel %vm964_vm11, %v963_v47, %v961_v46  ;;  %v965_v51 = vsel %vm964_vm11, %v961_v46, %v963_v47  ;;  %v2846_v43 = vpack.c.bf16 %v1439_v36, %v1438_v34  ;;  %v1423_v45 = vld [vmem:[%s4516_s11 + $0x8] sm:$0xff]  ;;  %v1440_v46 = vld [vmem:[%s4516_s11 + $0x90] sm:$0xff]  ;;  %v1441_v47 = vld [vmem:[%s4516_s11 + $0x98] sm:$0xff] }
 0x1a3   : > { %2807 = vmatprep.subr.bf16.mxu1 %v2806_v48  ;;  %v981_v52 = vmul.f32 %v3708_v35, %v966_v50  ;;  %v980_v53 = vmul.f32 %v3717_v12, %v965_v51  ;;  %v2848_v48 = vpack.c.bf16 %v1423_v45, %v1422_v42  ;;  %v1424_v50 = vld [vmem:[%s4516_s11 + $0x10] sm:$0xff]  ;;  %v1425_v51 = vld [vmem:[%s4516_s11 + $0x18] sm:$0xff]  ;;  %v1450_v36 = vld [vmem:[%s4516_s11 + $0xe0] sm:$0xff] }
 0x1a4   : > { %2809 = vmatpush1.bf16.msra.mxu1 %v2808_v49  ;;  %v2850_v49 = vpack.c.bf16 %v1441_v47, %v1440_v46  ;;  %v1433_v34 = vld [vmem:[%s4516_s11 + $0x58] sm:$0xff]  ;;  %v1451_v42 = vld [vmem:[%s4516_s11 + $0xe8] sm:$0xff]  ;;  %v1434_v46 = vld [vmem:[%s4516_s11 + $0x60] sm:$0xff] }
 0x1a5   : > { %1019 = vmatprep.subr.mxu1 %v981_v52  ;;  %v1442_v52 = vld [vmem:[%s4516_s11 + $0xa0] sm:$0xff]  ;;  %v2870_v45 = vpack.c.bf16 %v1451_v42, %v1450_v36  ;;  %v1435_v47 = vld [vmem:[%s4516_s11 + $0x68] sm:$0xff] }
 0x1a8   : > { %1020 = vmatpush1.msra.mxu1 %v980_v53  ;;  %v1443_v53 = vld [vmem:[%s4516_s11 + $0xa8] sm:$0xff] }
 0x1a9   : > { %2656 = vmatmul.mubr.msk.f32.vlgmr.msra.gmra.mrb[0].mxu1 %vm996_vm12, %v982_v54  ;;  %2847 = vmatprep.subr.bf16.mxu1 %v2846_v43  ;;  %v2852_v54 = vpack.c.bf16 %v1425_v51, %v1424_v50 }
 0x1aa   : > { %1073 = vmatprep.mubr.f32.mxu1 %v3318_v0  ;;  %2849 = vmatpush3.bf16.msra.mxu1 %v2848_v48  ;;  %v2872_v48 = vpack.c.bf16 %v1435_v47, %v1434_v46 }
 0x1ab   : > { %2851 = vmatprep.subr.bf16.mxu1 %v2850_v49 }
 0x1ad   : > { %2657 = vmatmul.mubr.msk.f32.gmra.mrb[2].mxu1 %vm996_vm12, %v983_v56  ;;  %v2854_v56 = vpack.c.bf16 %v1443_v53, %v1442_v52  ;;  %vm2201_vm12 = vcmp.ge.s32.totalorder %v809_v17, 16 }
 0x1ae   : > { %2853 = vmatpush3.bf16.msra.mxu1 %v2852_v54 }
 0x1af   : > { %2855 = vmatprep.subr.bf16.mxu1 %v2854_v56 }
 0x1b2   : > { %v989_v57 = vpop.permute.xlu1 %988  ;;  %v994_v1 = vpop.permute.xlu0 %993 }
 0x27c   : > { %v1069_v58 = vpop.f32.mrb[0].mxu1 }
 0x27d   : > { %v1070_v59 = vadd.f32 %v1069_v58, %v989_v57  ;;  %v1071_v60 = vpop.f32.mrb[1].mxu1  ;;  %v1427_v58 = vld [vmem:[%s4516_s11 + $0x28] sm:$0xff] }
 0x27e   : > { %v1072_v61 = vadd.f32 %v1071_v60, %v989_v57  ;;  %v1426_v57 = vld [vmem:[%s4516_s11 + $0x20] sm:$0xff]  ;;  %v1445_v60 = vld [vmem:[%s4516_s11 + $0xb8] sm:$0xff] }
 0x27f   : > { %vm1080_vm13 = vcmp.ge.f32.partialorder %v1070_v59, 0.0  ;;  %v1084_v62 = vmul.f32 0.2, %v1070_v59 }
 0x280   : > { %v1075_v2 = vpop.f32.mrb[2].mxu1  ;;  %v1085_v6 = vmul.f32 0.2, %v1072_v61  ;;  %vm1081_vm14 = vcmp.ge.f32.partialorder %v1072_v61, 0.0 }
 0x281   : > { %v3730_v3 = vsel %vm1080_vm13, %v1070_v59, %v1084_v62  ;;  %v1076_v4 = vadd.f32 %v1075_v2, %v994_v1  ;;  %v1077_v5 = vpop.f32.mrb[3].mxu1  ;;  %v1444_v59 = vld [vmem:[%s4516_s11 + $0xb0] sm:$0xff]  ;;  %v1429_v2 = vld [vmem:[%s4516_s11 + $0x38] sm:$0xff]  ;;  %vm2202_vm13 = vcmp.lt.s32.totalorder %v809_v17, 32 }
 0x282   : > { %v1078_v7 = vadd.f32 %v1077_v5, %v994_v1  ;;  %1092 = vrot.lane.b32.xlu1 %v3730_v3, %s3321_s1  ;;  %v3736_v18 = vsel %vm1081_vm14, %v1072_v61, %v1085_v6  ;;  %v2856_v61 = vpack.c.bf16 %v1427_v58, %v1426_v57  ;;  %v2858_v62 = vpack.c.bf16 %v1445_v60, %v1444_v59  ;;  %v1428_v1 = vld [vmem:[%s4516_s11 + $0x30] sm:$0xff]  ;;  %v1447_v5 = vld [vmem:[%s4516_s11 + $0xc8] sm:$0xff]  ;;  %vm2203_vm14 = vmand %vm2201_vm12, %vm2202_vm13 }
 0x283   : > { %vm1082_vm15 = vcmp.ge.f32.partialorder %v1076_v4, 0.0  ;;  %v1086_v9 = vmul.f32 0.2, %v1076_v4  ;;  %v2860_v6 = vpack.c.bf16 %v1429_v2, %v1428_v1  ;;  %vm2262_vm12 = vcmp.ge.s32.totalorder %v809_v17, 96 }
 0x284   : > { %vm1083_vm0 = vcmp.ge.f32.partialorder %v1078_v7, 0.0  ;;  %v1087_v11 = vmul.f32 0.2, %v1078_v7  ;;  %2857 = vmatpush3.bf16.msra.mxu1 %v2856_v61  ;;  %vm2263_vm13 = vcmp.lt.s32.totalorder %v809_v17, 112 }
 0x285   : > { %v3734_v13 = vsel %vm1082_vm15, %v1076_v4, %v1086_v9  ;;  %v1446_v4 = vld [vmem:[%s4516_s11 + $0xc0] sm:$0xff]  ;;  %2859 = vmatprep.subr.bf16.mxu1 %v2858_v62  ;;  %vm2209_vm15 = vcmp.ge.s32.totalorder %v809_v17, 32 }
 0x286   : > { %v3738_v19 = vsel %vm1083_vm0, %v1078_v7, %v1087_v11  ;;  %1108 = vrot.lane.b32.xlu1 %v3730_v3, %s4547_s0  ;;  %1094 = vrot.lane.b32.xlu0 %v3734_v13, %s3321_s1  ;;  %v2828_v26 = vpack.c.bf16 %v3734_v13, %v3730_v3  ;;  %v2862_v7 = vpack.c.bf16 %v1447_v5, %v1446_v4  ;;  %v1430_v9 = vld [vmem:[%s4516_s11 + $0x40] sm:$0xff]  ;;  %v1431_v11 = vld [vmem:[%s4516_s11 + $0x48] sm:$0xff]  ;;  %vm2210_vm0 = vcmp.lt.s32.totalorder %v809_v17, 48 }
 0x287   : > { %v2826_v27 = vpack.c.bf16 %v3738_v19, %v3736_v18 }
 0x288   : > { %2861 = vmatpush3.bf16.msra.mxu1 %v2860_v6 }
 0x289   : > { %2863 = vmatprep.subr.bf16.mxu1 %v2862_v7 }
 0x28a   : > { %1124 = vrot.lane.b32.xlu1 %v3730_v3, %s3322_s6  ;;  %1110 = vrot.lane.b32.xlu0 %v3734_v13, %s4547_s0 }
 0x28e   : > { %1140 = vrot.lane.b32.xlu1 %v3730_v3, %s4581_s4  ;;  %1126 = vrot.lane.b32.xlu0 %v3734_v13, %s3322_s6 }
 0x292   : > { %1156 = vrot.lane.b32.xlu1 %v3730_v3, %s4582_s24  ;;  %1142 = vrot.lane.b32.xlu0 %v3734_v13, %s4581_s4 }
 0x296   : > { %1172 = vrot.lane.b32.xlu1 %v3730_v3, %s4583_s26  ;;  %1158 = vrot.lane.b32.xlu0 %v3734_v13, %s4582_s24 }
 0x29a   : > { %1188 = vrot.lane.b32.xlu1 %v3730_v3, %s4584_s29  ;;  %1174 = vrot.lane.b32.xlu0 %v3734_v13, %s4583_s26 }
 0x29e   : > { %1096 = vrot.lane.b32.xlu1 %v3736_v18, %s3321_s1  ;;  %1190 = vrot.lane.b32.xlu0 %v3734_v13, %s4584_s29 }
 0x2a2   : > { %1112 = vrot.lane.b32.xlu1 %v3736_v18, %s4547_s0  ;;  %1098 = vrot.lane.b32.xlu0 %v3738_v19, %s3321_s1  ;;  %s3330_s1 = smov 63  }
 0x2a6   : > { %1128 = vrot.lane.b32.xlu1 %v3736_v18, %s3322_s6  ;;  %1114 = vrot.lane.b32.xlu0 %v3738_v19, %s4547_s0  ;;  %s3329_s0 = smov 56  }
 0x2aa   : > { %1144 = vrot.lane.b32.xlu1 %v3736_v18, %s4581_s4  ;;  %1130 = vrot.lane.b32.xlu0 %v3738_v19, %s3322_s6  ;;  %s4591_s6 = sld [smem:[#allocation24_spill]] }
 0x2ae   : > { %1204 = vrot.lane.b32.xlu1 %v3730_v3, %s4585_s30  ;;  %1146 = vrot.lane.b32.xlu0 %v3738_v19, %s4581_s4 }
 0x2b2   : > { %1160 = vrot.lane.b32.xlu1 %v3736_v18, %s4582_s24  ;;  %1206 = vrot.lane.b32.xlu0 %v3734_v13, %s4585_s30 }
 0x2b6   : > { %1176 = vrot.lane.b32.xlu1 %v3736_v18, %s4583_s26  ;;  %1162 = vrot.lane.b32.xlu0 %v3738_v19, %s4582_s24 }
 0x2ba   : > { %1192 = vrot.lane.b32.xlu1 %v3736_v18, %s4584_s29  ;;  %1178 = vrot.lane.b32.xlu0 %v3738_v19, %s4583_s26  ;;  %s3343_s26 = smov 73  }
 0x2be   : > { %1208 = vrot.lane.b32.xlu1 %v3736_v18, %s4585_s30  ;;  %1194 = vrot.lane.b32.xlu0 %v3738_v19, %s4584_s29 }
 0x2c2   : > { %1228 = vperm.xlu1 %3067, %v1224_v14   ;;  %1210 = vrot.lane.b32.xlu0 %v3738_v19, %s4585_s30  ;;  %v1449_v14 = vld [vmem:[%s4516_s11 + $0xd8] sm:$0xff]  ;;  %s4555_s30 = smov 46  }
 0x2c6   : > { %1233 = vperm.xlu1 %3067, %v1225_v29   ;;  %1326 = vperm.xlu0 %3066, %v1322_v30   ;;  %v2864_v29 = vpack.c.bf16 %v1431_v11, %v1430_v9  ;;  %v2866_v30 = vpack.c.bf16 %v1449_v14, %v1448_v28 }
 0x2c8   : > { %2865 = vmatpush3.bf16.msra.mxu1 %v2864_v29 }
 0x2c9   : > { %2867 = vmatprep.subr.bf16.mxu1 %v2866_v30 }
 0x2ca   : > { %1331 = vperm.xlu0 %3066, %v1323_v31   ;;  %v1432_v31 = vld [vmem:[%s4516_s11 + $0x50] sm:$0xff] }
 0x2cb   : > { %v2868_v43 = vpack.c.bf16 %v1433_v34, %v1432_v31 }
 0x2cd   : > { %2869 = vmatpush3.bf16.msra.mxu1 %v2868_v43 }
 0x2ce   : > { %2871 = vmatprep.subr.bf16.mxu1 %v2870_v45 }
 0x2d1   : > { %2873 = vmatpush3.bf16.msra.mxu1 %v2872_v48 }
 0x2f4   : > { %v1093_v49 = vpop.permute.xlu1 %1092 }
 0x2f8   : > { %v1109_v50 = vpop.permute.xlu1 %1108  ;;  %v1095_v51 = vpop.permute.xlu0 %1094 }
 0x2fc   : > { %v1125_v52 = vpop.permute.xlu1 %1124  ;;  %v1111_v53 = vpop.permute.xlu0 %1110 }
 0x300   : > { %v1141_v54 = vpop.permute.xlu1 %1140  ;;  %v1127_v56 = vpop.permute.xlu0 %1126 }
 0x304   : > { %v3906_v57 = vpop.permute.xlu1 %1156  ;;  %v1143_v58 = vpop.permute.xlu0 %1142 }
 0x308   : > { %v3908_v59 = vpop.permute.xlu1 %1172  ;;  %v3910_v60 = vpop.permute.xlu0 %1158 }
 0x30c   : > { %v3912_v61 = vpop.permute.xlu1 %1188  ;;  %v3914_v62 = vpop.permute.xlu0 %1174 }
 0x310   : > { %v1097_v1 = vpop.permute.xlu1 %1096  ;;  %v3916_v2 = vpop.permute.xlu0 %1190 }
 0x311   : > { %v1100_v4 = vsel %vm811_vm6, %v1093_v49, %v1097_v1  ;;  %v1102_v5 = vsel %vm811_vm6, %v1097_v1, %v1093_v49 }
 0x312   : > { %v1104_v28 = vmul.f32 %v1102_v5, %v3629_v39  ;;  %v1105_v14 = vmul.f32 %v1100_v4, %v3626_v38 }
 0x314   : > { %v1113_v6 = vpop.permute.xlu1 %1112  ;;  %v1099_v7 = vpop.permute.xlu0 %1098 }
 0x315   : > { %v1101_v9 = vsel %vm811_vm6, %v1095_v51, %v1099_v7  ;;  %v1103_v11 = vsel %vm811_vm6, %v1099_v7, %v1095_v51  ;;  %v1116_v31 = vsel %vm832_vm4, %v1109_v50, %v1113_v6  ;;  %v1118_v34 = vsel %vm832_vm4, %v1113_v6, %v1109_v50 }
 0x316   : > { %v1106_v29 = vmul.f32 %v1103_v11, %v3629_v39  ;;  %v1107_v30 = vmul.f32 %v1101_v9, %v3626_v38  ;;  %v1120_v39 = vmul.f32 %v1118_v34, %v3610_v33  ;;  %v1121_v38 = vmul.f32 %v1116_v31, %v3607_v32 }
 0x318   : > { %v2812_v36 = vpack.c.bf16 %v1106_v29, %v1104_v28  ;;  %v1129_v42 = vpop.permute.xlu1 %1128  ;;  %v1115_v43 = vpop.permute.xlu0 %1114  ;;  %v2810_v45 = vpack.c.bf16 %v1107_v30, %v1105_v14 }
 0x319   : > { %v1117_v46 = vsel %vm832_vm4, %v1111_v53, %v1115_v43  ;;  %v1119_v47 = vsel %vm832_vm4, %v1115_v43, %v1111_v53  ;;  %v1132_v50 = vsel %vm854_vm5, %v1125_v52, %v1129_v42  ;;  %v1134_v51 = vsel %vm854_vm5, %v1129_v42, %v1125_v52 }
 0x31a   : > { %v1122_v48 = vmul.f32 %v1119_v47, %v3610_v33  ;;  %v1123_v49 = vmul.f32 %v1117_v46, %v3607_v32  ;;  %2811 = vmatprep.subr.bf16.mxu0 %v2810_v45  ;;  %v1136_v32 = vmul.f32 %v1134_v51, %v3657_v55  ;;  %v1137_v7 = vmul.f32 %v1132_v50, %v3632_v40 }
 0x31b   : > { %2813 = vmatpush1.bf16.msra.mxu0 %v2812_v36 }
 0x31c   : > { %v2816_v1 = vpack.c.bf16 %v1122_v48, %v1120_v39  ;;  %v1145_v4 = vpop.permute.xlu1 %1144  ;;  %v1131_v5 = vpop.permute.xlu0 %1130  ;;  %v2814_v53 = vpack.c.bf16 %v1123_v49, %v1121_v38 }
 0x31d   : > { %v1133_v6 = vsel %vm854_vm5, %v1127_v56, %v1131_v5  ;;  %v1135_v33 = vsel %vm854_vm5, %v1131_v5, %v1127_v56  ;;  %v1148_v52 = vsel %vm876_vm7, %v1141_v54, %v1145_v4  ;;  %v1150_v28 = vsel %vm876_vm7, %v1145_v4, %v1141_v54 }
 0x31e   : > { %v1138_v9 = vmul.f32 %v1135_v33, %v3657_v55  ;;  %v1139_v11 = vmul.f32 %v1133_v6, %v3632_v40  ;;  %2815 = vmatprep.subr.bf16.mxu0 %v2814_v53  ;;  %v1152_v40 = vmul.f32 %v1150_v28, %v3635_v41  ;;  %v1153_v34 = vmul.f32 %v1148_v52, %v3623_v37 }
 0x31f   : > { %2817 = vmatpush1.bf16.msra.mxu0 %v2816_v1  ;;  %vm1535_vm5 = vcmask 1048064  }
 0x320   : > { %v2820_v14 = vpack.c.bf16 %v1138_v9, %v1136_v32  ;;  %v1205_v29 = vpop.permute.xlu1 %1204  ;;  %v1147_v30 = vpop.permute.xlu0 %1146  ;;  %v2818_v56 = vpack.c.bf16 %v1139_v11, %v1137_v7 }
 0x321   : > { %v1149_v31 = vsel %vm876_vm7, %v1143_v58, %v1147_v30  ;;  %v1151_v55 = vsel %vm876_vm7, %v1147_v30, %v1143_v58 }
 0x322   : > { %v1154_v36 = vmul.f32 %v1151_v55, %v3635_v41  ;;  %v1155_v42 = vmul.f32 %v1149_v31, %v3623_v37  ;;  %2819 = vmatprep.subr.bf16.mxu0 %v2818_v56 }
 0x323   : > { %2821 = vmatpush1.bf16.msra.mxu0 %v2820_v14 }
 0x324   : > { %v2824_v54 = vpack.c.bf16 %v1154_v36, %v1152_v40  ;;  %v1161_v43 = vpop.permute.xlu1 %1160  ;;  %v1207_v45 = vpop.permute.xlu0 %1206  ;;  %v2822_v46 = vpack.c.bf16 %v1155_v42, %v1153_v34  ;;  %v1220_v34 = vld [vmem:[%s4586_s3] sm:$0xff]  ;;  %v1453_v36 = vld [vmem:[%s4516_s11 + $0xf8] sm:$0xff] }
 0x325   : > { %v1164_v47 = vsel %vm898_vm8, %v3906_v57, %v1161_v43  ;;  %v1166_v58 = vsel %vm898_vm8, %v1161_v43, %v3906_v57  ;;  %v1437_v43 = vld [vmem:[%s4516_s11 + $0x78] sm:$0xff] }
 0x326   : > { %2823 = vmatprep.subr.bf16.mxu0 %v2822_v46  ;;  %v1168_v48 = vmul.f32 %v1164_v47, %v3664_v63  ;;  %v1169_v49 = vmul.f32 %v1166_v58, %v3639_v44 }
 0x327   : > { %2825 = vmatpush1.bf16.msra.mxu0 %v2824_v54  ;;  %v1436_v54 = vld [vmem:[%s4516_s11 + $0x70] sm:$0xff] }
 0x328   : > { %v1177_v39 = vpop.permute.xlu1 %1176  ;;  %2827 = vmatprep.subr.bf16.mxu0 %v2826_v27  ;;  %v1163_v37 = vpop.permute.xlu0 %1162 }
 0x329   : > { %v1165_v41 = vsel %vm898_vm8, %v3910_v60, %v1163_v37  ;;  %v1167_v38 = vsel %vm898_vm8, %v1163_v37, %v3910_v60  ;;  %v1180_v18 = vsel %vm920_vm9, %v3908_v59, %v1177_v39  ;;  %v1182_v19 = vsel %vm920_vm9, %v1177_v39, %v3908_v59 }
 0x32a   : > { %v1170_v57 = vmul.f32 %v1165_v41, %v3664_v63  ;;  %v1171_v50 = vmul.f32 %v1167_v38, %v3639_v44  ;;  %v1184_v4 = vmul.f32 %v1180_v18, %v3681_v15  ;;  %v1185_v59 = vmul.f32 %v1182_v19, %v3684_v16 }
 0x32b   : > { %2829 = vmatpush1.bf16.msra.mxu0 %v2828_v26  ;;  %vm2082_vm8 = vcmask 523264  }
 0x32c   : > { %v2832_v27 = vpack.c.bf16 %v1170_v57, %v1168_v48  ;;  %v1193_v60 = vpop.permute.xlu1 %1192  ;;  %v1179_v51 = vpop.permute.xlu0 %1178  ;;  %v2830_v1 = vpack.c.bf16 %v1171_v50, %v1169_v49 }
 0x32d   : > { %v1181_v44 = vsel %vm920_vm9, %v3914_v62, %v1179_v51  ;;  %v1183_v63 = vsel %vm920_vm9, %v1179_v51, %v3914_v62  ;;  %v1196_v13 = vsel %vm942_vm10, %v3912_v61, %v1193_v60  ;;  %v1198_v26 = vsel %vm942_vm10, %v1193_v60, %v3912_v61 }
 0x32e   : > { %v1186_v5 = vmul.f32 %v1181_v44, %v3681_v15  ;;  %v1187_v3 = vmul.f32 %v1183_v63, %v3684_v16  ;;  %2831 = vmatprep.subr.bf16.mxu0 %v2830_v1  ;;  %v1200_v32 = vmul.f32 %v1196_v13, %v3689_v22  ;;  %v1201_v7 = vmul.f32 %v1198_v26, %v3692_v23 }
 0x32f   : > { %2833 = vmatpush1.bf16.msra.mxu0 %v2832_v27 }
 0x330   : > { %v2836_v53 = vpack.c.bf16 %v1186_v5, %v1184_v4  ;;  %v1209_v62 = vpop.permute.xlu1 %1208  ;;  %v1195_v6 = vpop.permute.xlu0 %1194  ;;  %v2834_v33 = vpack.c.bf16 %v1187_v3, %v1185_v59 }
 0x331   : > { %v1197_v15 = vsel %vm942_vm10, %v3916_v2, %v1195_v6  ;;  %v1199_v16 = vsel %vm942_vm10, %v1195_v6, %v3916_v2  ;;  %v1212_v11 = vsel %vm964_vm11, %v1205_v29, %v1209_v62  ;;  %v1214_v52 = vsel %vm964_vm11, %v1209_v62, %v1205_v29  ;;  %v2663_v62 = vld [vmem:[%s4521_s16 + $0x1] ss:$0 sm:$0xff] }
 0x332   : > { %v1202_v9 = vmul.f32 %v1197_v15, %v3689_v22  ;;  %v1203_v61 = vmul.f32 %v1199_v16, %v3692_v23  ;;  %2835 = vmatprep.subr.bf16.mxu0 %v2834_v33  ;;  %v1216_v22 = vmul.f32 %v1212_v11, %v3717_v12  ;;  %v1217_v23 = vmul.f32 %v1214_v52, %v3708_v35  ;;  %v2665_v15 = vld [vmem:[%s4521_s16 + $0x3] ss:$0 sm:$0xff]  ;;  %v2664_v16 = vld [vmem:[%s4521_s16 + $0x2] ss:$0 sm:$0xff]  ;;  %v2662_v11 = vld [vmem:[%s4521_s16] ss:$0 sm:$0xff] }
 0x333   : > { %2837 = vmatpush1.bf16.msra.mxu0 %v2836_v53  ;;  %vm4309_vm10 = vcmp.lt.s32.totalorder %v809_v17, 16 }
 0x334   : > { %v2840_v28 = vpack.c.bf16 %v1202_v9, %v1200_v32  ;;  %v1211_v14 = vpop.permute.xlu0 %1210  ;;  %v2838_v30 = vpack.c.bf16 %v1203_v61, %v1201_v7  ;;  %v2667_v32 = vld [vmem:[%s4521_s16 + $0x6] ss:$0 sm:$0xff]  ;;  %v2666_v7 = vld [vmem:[%s4521_s16 + $0x5] ss:$0 sm:$0xff]  ;;  %v2669_v9 = vld [vmem:[%s4521_s16 + $0x8] ss:$0 sm:$0xff] }
 0x335   : > { %v1213_v2 = vsel %vm964_vm11, %v1207_v45, %v1211_v14  ;;  %v1215_v56 = vsel %vm964_vm11, %v1211_v14, %v1207_v45  ;;  %v2876_v45 = vpack.c.bf16 %v1437_v43, %v1436_v54  ;;  %v2668_v61 = vld [vmem:[%s4521_s16 + $0x7] ss:$0 sm:$0xff] }
 0x336   : > { %v1218_v31 = vmul.f32 %v1213_v2, %v3717_v12  ;;  %v1219_v55 = vmul.f32 %v1215_v56, %v3708_v35  ;;  %2839 = vmatprep.subr.bf16.mxu0 %v2838_v30  ;;  %v1222_v35 = vld [vmem:[%s4586_s3 + $0x10] sm:$0xff] }
 0x337   : > { %2841 = vmatpush1.bf16.msra.mxu0 %v2840_v28  ;;  %v1452_v12 = vld [vmem:[%s4516_s11 + $0xf0] sm:$0xff] }
 0x338   : > { %v2844_v29 = vpack.c.bf16 %v1218_v31, %v1216_v22  ;;  %v2842_v40 = vpack.c.bf16 %v1219_v55, %v1217_v23  ;;  %v2874_v42 = vpack.c.bf16 %v1453_v36, %v1452_v12 }
 0x33a   : > { %2843 = vmatprep.subr.bf16.mxu0 %v2842_v40  ;;  %2875 = vmatprep.subr.bf16.mxu1 %v2874_v42 }
 0x33b   : > { %2845 = vmatpush1.bf16.msra.mxu0 %v2844_v29  ;;  %2877 = vmatpush3.bf16.msra.mxu1 %v2876_v45 }
 0x33c   : > { %1341 = vmatprep.subr.mxu0 %v3531_v10  ;;  %v1320_v10 = vld [vmem:[%s4513_s8] sm:$0xff] }
 0x33e   : > { %1308 = vmatmul.mubr.f32.vlgmr.msra.gmra.mrb[2].mxu0 %v1220_v34 }
 0x33f   : > { %1342 = vmatpush1.msra.mxu0 %v3529_v8  ;;  %2659 = vmatprep.mubr.msk.f32.mxu0 %vm1236_vm1, %v1223_v21  ;;  %v1321_v8 = vld [vmem:[%s4513_s8 + $0x8] sm:$0xff] }
 0x341   : > { %v1229_v47 = vpop.permute.xlu1 %1228 }
 0x342   : > { %1314 = vmatmul.mubr.f32.gmra.mrb[4].mxu0 %v1222_v35 }
 0x343   : > { %1405 = vmatprep.mubr.f32.mxu0 %v3318_v0 }
 0x345   : > { %v1327_v46 = vpop.permute.xlu0 %1326  ;;  %v1234_v48 = vpop.permute.xlu1 %1233 }
 0x346   : > { %2660 = vmatmul.mubr.msk.f32.vlgmr.msra.gmra.mrb[2].mxu0 %vm1334_vm2, %v1320_v10  ;;  %v2983_v58 = vadd.f32 %v1327_v46, %v1229_v47 }
 0x347   : > { %1411 = vmatprep.mubr.f32.mxu0 %v3318_v0 }
 0x349   : > { %v1332_v37 = vpop.permute.xlu0 %1331 }
 0x34a   : > { %2661 = vmatmul.mubr.msk.f32.gmra.mrb[4].mxu0 %vm1334_vm2, %v1321_v8  ;;  %v2987_v57 = vadd.f32 %v1332_v37, %v1234_v48  ;;  %vm2211_vm2 = vmand %vm2209_vm15, %vm2210_vm0  ;;  %vm2270_vm15 = vcmp.ge.s32.totalorder %v809_v17, 112  ;;  %vm2271_vm0 = vcmp.lt.s32.totalorder %v809_v17, 128 }
 0x419   : > { %v1407_v39 = vpop.f32.mrb[2].mxu0 }
 0x41a   : > { %v1409_v41 = vpop.f32.mrb[3].mxu0  ;;  %v2984_v49 = vadd.f32 %v2983_v58, %v1407_v39  ;;  %v3338_v39 = vmov 0.0|0.0  }
 0x41b   : > { %v2986_v38 = vadd.f32 %v2983_v58, %v1409_v41  ;;  %2878 = vmatprep.subr.bf16.mxu0 %v3338_v39  ;;  %2905 = vmatprep.subr.bf16.mxu1 %v3338_v39 }
 0x41d   : > { %v1413_v50 = vpop.f32.mrb[4].mxu0  ;;  %1518 = vmatprep.mubr.f32.mxu1 %v2986_v38 }
 0x41e   : > { %v1415_v18 = vpop.f32.mrb[5].mxu0  ;;  %1519 = vmatmul.mubr.f32.vlgmr.msra.gmra.mrb[4].mxu1 %v2984_v49  ;;  %v2988_v27 = vadd.f32 %v2987_v57, %v1413_v50 }
 0x41f   : > { %v2990_v19 = vadd.f32 %v2987_v57, %v1415_v18 }
 0x421   : > { %1523 = vmatprep.mubr.f32.mxu1 %v2990_v19 }
 0x422   : > { %1524 = vmatmul.mubr.f32.gmra.mrb[6].mxu1 %v2988_v27 }
 0x4f1   : > { %v2714_v60 = vpop.f32.mrb[4].mxu1 }
 0x4f2   : > { %v2715_v51 = vpop.f32.mrb[5].mxu1 }
 0x4f3   : > { %v4064_v1 = vadd.f32 %v2715_v51, %v2714_v60 }
 0x4f5   : > { %v2717_v44 = vpop.f32.mrb[6].mxu1  ;;  %vm1529_vm3 = vcmp.ge.f32.partialorder %v4064_v1, 0.0  ;;  %v1531_v63 = vmul.f32 0.2, %v4064_v1 }
 0x4f6   : > { %v2718_v4 = vpop.f32.mrb[7].mxu1 }
 0x4f7   : > { %v4068_v59 = vadd.f32 %v2718_v4, %v2717_v44  ;;  %v4071_v5 = vsel %vm1529_vm3, %v4064_v1, %v1531_v63  ;;  %vm2217_vm3 = vcmp.ge.s32.totalorder %v809_v17, 48 }
 0x4f8   : > { %1536 = vrot.lane.b32.xlu1 %v4071_v5, %s4552_s10 }
 0x4f9   : > { %vm1530_vm4 = vcmp.ge.f32.partialorder %v4068_v59, 0.0  ;;  %v1532_v3 = vmul.f32 0.2, %v4068_v59 }
 0x4fb   : > { %v4078_v13 = vsel %vm1530_vm4, %v4068_v59, %v1532_v3  ;;  %vm2218_vm4 = vcmp.lt.s32.totalorder %v809_v17, 64 }
 0x4fc   : > { %1539 = vrot.lane.b32.xlu0 %v4078_v13, %s4552_s10  ;;  %v3083_v54 = vpack.i.bf16 %v4078_v13, %v4071_v5 }
 0x56a   : > { %v1537_v26 = vpop.permute.xlu1 %1536 }
 0x56b   : > { %v1538_v53 = vsel %vm1535_vm5, %v1537_v26, %v4071_v5 }
 0x56c   : > { %1542 = vrot.lane.b32.xlu1 %v1538_v53, %s4552_s10 }
 0x56e   : > { %v1540_v6 = vpop.permute.xlu0 %1539 }
 0x56f   : > { %v1541_v33 = vsel %vm1535_vm5, %v1540_v6, %v4078_v13 }
 0x570   : > { %1565 = vrot.lane.b32.xlu1 %v2663_v62, %s3329_s0  ;;  %1544 = vrot.lane.b32.xlu0 %v1541_v33, %s4552_s10  ;;  %s3332_s10 = smov 7   ;;  %s3339_s0 = smov 54   ;;  %v1688_v33 = vld [vmem:[%s4518_s13] sm:$0xff] }
 0x574   : > { %1587 = vrot.lane.b32.xlu1 %v2665_v15, %s3330_s1  ;;  %1576 = vrot.lane.b32.xlu0 %v2664_v16, %s3331_s2  ;;  %s3333_s1 = smov 9   ;;  %s3334_s2 = smov 8   ;;  %v1689_v16 = vld [vmem:[%s4518_s13 + $0x8] sm:$0xff] }
 0x578   : > { %1609 = vrot.lane.b32.xlu1 %v2667_v32, %s3332_s10  ;;  %1598 = vrot.lane.b32.xlu0 %v2666_v7, %s4581_s4  ;;  %s3336_s4 = smov 126   ;;  %s3337_s10 = smov 120   ;;  %v1685_v32 = vld [vmem:[%s4517_s12 + $0x8] sm:$0xff] }
 0x579   : > { %2670 = vmatprep.mubr.msk.f32.mxu0 %vm1236_vm1, %v1685_v32 }
 0x57c   : > { %1631 = vrot.lane.b32.xlu1 %v2669_v9, %s3333_s1  ;;  %1620 = vrot.lane.b32.xlu0 %v2668_v61, %s3334_s2 }
 0x580   : > { %1554 = vrot.lane.b32.xlu0 %v2662_v11, %s3335_s25 }
 0x5de   : > { %v1543_v52 = vpop.permute.xlu1 %1542 }
 0x5df   : > { %v1546_v28 = vsel %vm1535_vm5, %v1543_v52, %v4071_v5 }
 0x5e2   : > { %v4116_v14 = vpop.permute.xlu1 %1565  ;;  %v1545_v30 = vpop.permute.xlu0 %1544 }
 0x5e3   : > { %v1568_v2 = vmul.f32 %v4116_v14, %v1546_v28  ;;  %v1547_v56 = vsel %vm1535_vm5, %v1545_v30, %v4078_v13 }
 0x5e4   : > { %v1569_v22 = vmul.f32 %v4116_v14, %v1547_v56 }
 0x5e6   : > { %v4122_v23 = vpop.permute.xlu1 %1587  ;;  %v4124_v31 = vpop.permute.xlu0 %1576  ;;  %v3068_v55 = vpack.i.bf16 %v1569_v22, %v1568_v2 }
 0x5e7   : > { %v1590_v29 = vmul.f32 %v4122_v23, %v1546_v28  ;;  %v1591_v40 = vmul.f32 %v4122_v23, %v1547_v56  ;;  %v1579_v34 = vmul.f32 %v4124_v31, %v1546_v28  ;;  %v1580_v21 = vmul.f32 %v4124_v31, %v1547_v56 }
 0x5e8   : > { %3069 = vrot.lane.b32.xlu1 %v3068_v55, %s4582_s24 }
 0x5e9   : > { %v3073_v35 = vpack.i.bf16 %v1580_v21, %v1579_v34  ;;  %v3078_v10 = vpack.i.bf16 %v1591_v40, %v1590_v29 }
 0x5ea   : > { %v4131_v8 = vpop.permute.xlu1 %1609  ;;  %v4133_v12 = vpop.permute.xlu0 %1598 }
 0x5eb   : > { %v1601_v36 = vmul.f32 %v4133_v12, %v1546_v28  ;;  %v1602_v42 = vmul.f32 %v4133_v12, %v1547_v56  ;;  %3074 = vrot.lane.b32.xlu0 %v3073_v35, %s3336_s4  ;;  %v1612_v43 = vmul.f32 %v4131_v8, %v1546_v28  ;;  %v1613_v45 = vmul.f32 %v4131_v8, %v1547_v56 }
 0x5ec   : > { %3079 = vrot.lane.b32.xlu1 %v3078_v10, %s3337_s10 }
 0x5ed   : > { %v3088_v46 = vpack.i.bf16 %v1602_v42, %v1601_v36  ;;  %v3093_v49 = vpack.i.bf16 %v1613_v45, %v1612_v43 }
 0x5ee   : > { %v4143_v47 = vpop.permute.xlu1 %1631  ;;  %v4145_v58 = vpop.permute.xlu0 %1620 }
 0x5ef   : > { %v1623_v37 = vmul.f32 %v4145_v58, %v1546_v28  ;;  %v1624_v41 = vmul.f32 %v4145_v58, %v1547_v56  ;;  %3084 = vrot.lane.b32.xlu0 %v3083_v54, %s3335_s25  ;;  %v1634_v38 = vmul.f32 %v4143_v47, %v1546_v28  ;;  %v1635_v48 = vmul.f32 %v4143_v47, %v1547_v56 }
 0x5f0   : > { %3089 = vrot.lane.b32.xlu1 %v3088_v46, %s3339_s0 }
 0x5f1   : > { %v3098_v57 = vpack.i.bf16 %v1624_v41, %v1623_v37  ;;  %v3103_v27 = vpack.i.bf16 %v1635_v48, %v1634_v38 }
 0x5f2   : > { %v4155_v50 = vpop.permute.xlu0 %1554 }
 0x5f3   : > { %v1557_v18 = vmul.f32 %v4155_v50, %v1546_v28  ;;  %v1558_v19 = vmul.f32 %v4155_v50, %v1547_v56  ;;  %3094 = vrot.lane.b32.xlu0 %v3093_v49, %s3340_s5 }
 0x5f4   : > { %3099 = vrot.lane.b32.xlu1 %v3098_v57, %s4554_s28  ;;  %s4588_s28 = smov 64  }
 0x5f5   : > { %v3108_v60 = vpack.i.bf16 %v1558_v19, %v1557_v18 }
 0x5f7   : > { %3104 = vrot.lane.b32.xlu0 %v3103_v27, %s4555_s30 }
 0x5f8   : > { %3109 = vrot.lane.b32.xlu1 %v3108_v60, %s3343_s26  ;;  %v1684_v60 = vld [vmem:[%s4517_s12] sm:$0xff] }
 0x65a   : > { %v3070_v51 = vpop.permute.xlu1 %3069 }
 0x65b   : > { %3114 = vrot.lane.b32.xlu0 %v3070_v51, %s3343_s26  ;;  %v1687_v51 = vld [vmem:[%s4517_s12 + $0x18] sm:$0xff] }
 0x65d   : > { %v3075_v44 = vpop.permute.xlu0 %3074 }
 0x65e   : > { %v3080_v63 = vpop.permute.xlu1 %3079  ;;  %3119 = vrot.lane.b32.xlu1 %v3075_v44, %s3343_s26  ;;  %v1686_v44 = vld [vmem:[%s4517_s12 + $0x10] sm:$0xff] }
 0x65f   : > { %3124 = vrot.lane.b32.xlu0 %v3080_v63, %s3343_s26 }
 0x661   : > { %v3085_v4 = vpop.permute.xlu0 %3084 }
 0x662   : > { %v3090_v5 = vpop.permute.xlu1 %3089  ;;  %3129 = vrot.lane.b32.xlu1 %v3085_v4, %s3343_s26 }
 0x663   : > { %3134 = vrot.lane.b32.xlu0 %v3090_v5, %s3343_s26 }
 0x665   : > { %v3095_v3 = vpop.permute.xlu0 %3094 }
 0x666   : > { %v3100_v13 = vpop.permute.xlu1 %3099  ;;  %3139 = vrot.lane.b32.xlu1 %v3095_v3, %s3343_s26 }
 0x667   : > { %3144 = vrot.lane.b32.xlu0 %v3100_v13, %s3343_s26 }
 0x669   : > { %v3105_v26 = vpop.permute.xlu0 %3104 }
 0x66a   : > { %v3110_v53 = vpop.permute.xlu1 %3109  ;;  %3149 = vrot.lane.b32.xlu1 %v3105_v26, %s3343_s26 }
 0x66b   : > { %v3112_v62 = vunpack.i.h.bf16 %v3110_v53  ;;  %v3111_v6 = vunpack.i.l.bf16 %v3110_v53  ;;  %1692 = vperm.xlu0 %3066, %v1688_v33  }
 0x66d   : > { %v2879_v15 = vpack.c.bf16 %v3112_v62, %v3111_v6 }
 0x66e   : > { %1697 = vperm.xlu1 %3067, %v1689_v16  }
 0x66f   : > { %2880 = vmatpush1.bf16.msra.mxu0 %v2879_v15 }
 0x670   : > { %2881 = vmatprep.subr.bf16.mxu0 %v3338_v39 }
 0x6cd   : > { %v3115_v7 = vpop.permute.xlu0 %3114 }
 0x6ce   : > { %v3117_v9 = vunpack.i.h.bf16 %v3115_v7  ;;  %v3116_v61 = vunpack.i.l.bf16 %v3115_v7 }
 0x6d0   : > { %v2882_v11 = vpack.c.bf16 %v3117_v9, %v3116_v61  ;;  %v3120_v52 = vpop.permute.xlu1 %3119 }
 0x6d1   : > { %v3122_v28 = vunpack.i.h.bf16 %v3120_v52  ;;  %v3121_v30 = vunpack.i.l.bf16 %v3120_v52  ;;  %v3125_v2 = vpop.permute.xlu0 %3124 }
 0x6d2   : > { %2883 = vmatpush1.bf16.msra.mxu0 %v2882_v11  ;;  %v3127_v22 = vunpack.i.h.bf16 %v3125_v2  ;;  %v3126_v55 = vunpack.i.l.bf16 %v3125_v2 }
 0x6d3   : > { %v2885_v56 = vpack.c.bf16 %v3122_v28, %v3121_v30  ;;  %2884 = vmatprep.subr.bf16.mxu0 %v3338_v39 }
 0x6d4   : > { %v3130_v29 = vpop.permute.xlu1 %3129  ;;  %v2888_v40 = vpack.c.bf16 %v3127_v22, %v3126_v55 }
 0x6d5   : > { %v3132_v34 = vunpack.i.h.bf16 %v3130_v29  ;;  %v3131_v21 = vunpack.i.l.bf16 %v3130_v29  ;;  %v3135_v35 = vpop.permute.xlu0 %3134 }
 0x6d6   : > { %2886 = vmatpush1.bf16.msra.mxu0 %v2885_v56  ;;  %v3137_v36 = vunpack.i.h.bf16 %v3135_v35  ;;  %v3136_v42 = vunpack.i.l.bf16 %v3135_v35 }
 0x6d7   : > { %2887 = vmatprep.subr.bf16.mxu0 %v3338_v39  ;;  %v2891_v10 = vpack.c.bf16 %v3132_v34, %v3131_v21 }
 0x6d8   : > { %v3140_v54 = vpop.permute.xlu1 %3139  ;;  %v2894_v43 = vpack.c.bf16 %v3137_v36, %v3136_v42 }
 0x6d9   : > { %v3142_v45 = vunpack.i.h.bf16 %v3140_v54  ;;  %v3141_v46 = vunpack.i.l.bf16 %v3140_v54  ;;  %v3145_v37 = vpop.permute.xlu0 %3144 }
 0x6da   : > { %2889 = vmatpush1.bf16.msra.mxu0 %v2888_v40  ;;  %v3147_v38 = vunpack.i.h.bf16 %v3145_v37  ;;  %v3146_v48 = vunpack.i.l.bf16 %v3145_v37 }
 0x6db   : > { %2890 = vmatprep.subr.bf16.mxu0 %v3338_v39  ;;  %v2897_v41 = vpack.c.bf16 %v3142_v45, %v3141_v46 }
 0x6dc   : > { %v3150_v49 = vpop.permute.xlu1 %3149  ;;  %v2900_v57 = vpack.c.bf16 %v3147_v38, %v3146_v48 }
 0x6dd   : > { %v3152_v18 = vunpack.i.h.bf16 %v3150_v49  ;;  %v3151_v19 = vunpack.i.l.bf16 %v3150_v49 }
 0x6de   : > { %2892 = vmatpush1.bf16.msra.mxu0 %v2891_v10 }
 0x6df   : > { %2893 = vmatprep.subr.bf16.mxu0 %v3338_v39  ;;  %v2903_v27 = vpack.c.bf16 %v3152_v18, %v3151_v19 }
 0x6e2   : > { %2895 = vmatpush1.bf16.msra.mxu0 %v2894_v43 }
 0x6e3   : > { %2896 = vmatprep.subr.bf16.mxu0 %v3338_v39 }
 0x6e6   : > { %2898 = vmatpush1.bf16.msra.mxu0 %v2897_v41 }
 0x6e7   : > { %2899 = vmatprep.subr.bf16.mxu0 %v3338_v39 }
 0x6ea   : > { %2901 = vmatpush1.bf16.msra.mxu0 %v2900_v57  ;;  %v1693_v63 = vpop.permute.xlu0 %1692 }
 0x6eb   : > { %2902 = vmatprep.subr.bf16.mxu0 %v3338_v39 }
 0x6ed   : > { %v1698_v26 = vpop.permute.xlu1 %1697 }
 0x6ee   : > { %2904 = vmatpush1.bf16.msra.mxu0 %v2903_v27 }
 0x6f1   : > { %1827 = vmatmul.mubr.f32.vlgmr.msra.gmra.mrb[6].mxu0 %v1684_v60 }
 0x6f2   : > { %2671 = vmatprep.mubr.msk.f32.mxu0 %vm1236_vm1, %v1687_v51 }
 0x6f5   : > { %1832 = vmatmul.mubr.f32.gmra.mrb[8].mxu0 %v1686_v44 }
 0x7c4   : > { %v1828_v4 = vpop.f32.mrb[6].mxu0 }
 0x7c5   : > { %v1829_v5 = vadd.f32 %v1828_v4, %v1693_v63  ;;  %v1830_v3 = vpop.f32.mrb[7].mxu0  ;;  %v1923_v63 = vld [vmem:[%s4520_s15] sm:$0xff]  ;;  %v1924_v4 = vld [vmem:[%s4520_s15 + $0x8] sm:$0xff] }
 0x7c6   : > { %v1920_v3 = vld [vmem:[%s4591_s6 + $0x8] sm:$0xff] }
 0x7c7   : > { %vm1837_vm6 = vcmp.ge.f32.partialorder %v1829_v5, 0.0  ;;  %v1839_v13 = vmul.f32 0.2, %v1829_v5  ;;  %2672 = vmatprep.mubr.msk.f32.mxu1 %vm1236_vm1, %v1920_v3 }
 0x7c8   : > { %v1833_v53 = vpop.f32.mrb[8].mxu0 }
 0x7c9   : > { %v1834_v62 = vadd.f32 %v1833_v53, %v1698_v26  ;;  %v1835_v6 = vpop.f32.mrb[9].mxu0  ;;  %v1841_v33 = vsel %vm1837_vm6, %v1829_v5, %v1839_v13  ;;  %v2074_v13 = vld [vmem:[%s4522_s17] sm:$0xff]  ;;  %v2075_v26 = vld [vmem:[%s4522_s17 + $0x8] sm:$0xff]  ;;  %v2076_v53 = vld [vmem:[%s4522_s17 + $0x10] sm:$0xff]  ;;  %vm2240_vm6 = vcmp.lt.s32.totalorder %v809_v17, 80 }
 0x7ca   : > { %1843 = vrot.lane.b32.xlu0 %v1841_v33, %s4588_s28  ;;  %v2077_v6 = vld [vmem:[%s4522_s17 + $0x18] sm:$0xff] }
 0x7cb   : > { %vm1838_vm7 = vcmp.ge.f32.partialorder %v1834_v62, 0.0  ;;  %v1840_v15 = vmul.f32 0.2, %v1834_v62 }
 0x7cd   : > { %v1842_v16 = vsel %vm1838_vm7, %v1834_v62, %v1840_v15  ;;  %v2932_v62 = vpack.c.bf16 %v2075_v26, %v2074_v13  ;;  %v3344_v26 = vmov 1966171168   ;;  %vm2219_vm7 = vmand %vm2217_vm3, %vm2218_vm4  ;;  %vm3348_vm3 = vmmov 0  }
 0x7ce   : > { %1846 = vrot.lane.b32.xlu1 %v1842_v16, %s4588_s28  ;;  %v3168_v35 = vpack.i.bf16 %v1842_v16, %v1841_v33 }
 0x7cf   : > { %2933 = vmatprep.subr.bf16.mxu0 %v2932_v62 }
 0x7d0   : > { %2935 = vmatpush3.bf16.msra.mxu0 %v2932_v62 }
 0x83c   : > { %v1844_v32 = vpop.permute.xlu0 %1843 }
 0x83d   : > { %v1845_v7 = vsel %vm1535_vm5, %v1844_v32, %v1841_v33 }
 0x83e   : > { %1849 = vrot.lane.b32.xlu0 %v1845_v7, %s4588_s28 }
 0x840   : > { %v1847_v9 = vpop.permute.xlu1 %1846 }
 0x841   : > { %v1848_v61 = vsel %vm1535_vm5, %v1847_v9, %v1842_v16 }
 0x842   : > { %1851 = vrot.lane.b32.xlu1 %v1848_v61, %s4588_s28 }
 0x8b0   : > { %v1850_v11 = vpop.permute.xlu0 %1849 }
 0x8b1   : > { %v1853_v52 = vsel %vm1535_vm5, %v1850_v11, %v1841_v33  ;;  %v2936_v33 = vpack.c.bf16 %v2077_v6, %v2076_v53  ;;  %v2177_v53 = vunpack.c.l.s4 %v3344_v26  ;;  %v2371_v6 = vld [vmem:[%s4523_s18 + $0x88] sm:$0xff] }
 0x8b2   : > { %v1859_v2 = vmul.f32 %v1853_v52, %v4124_v31  ;;  %v1857_v22 = vmul.f32 %v1853_v52, %v4116_v14  ;;  %v1861_v21 = vmul.f32 %v1853_v52, %v4122_v23  ;;  %v1863_v42 = vmul.f32 %v1853_v52, %v4133_v12 }
 0x8b3   : > { %v1869_v46 = vmul.f32 %v1853_v52, %v4143_v47  ;;  %v1867_v37 = vmul.f32 %v1853_v52, %v4145_v58  ;;  %2937 = vmatprep.subr.bf16.mxu0 %v2936_v33  ;;  %v2178_v62 = vunpack.c.0.s8 %v2177_v53  ;;  %v2380_v53 = vld [vmem:[%s4523_s18 + $0xd0] sm:$0xff] }
 0x8b4   : > { %v1852_v28 = vpop.permute.xlu1 %1851  ;;  %2939 = vmatpush3.bf16.msra.mxu0 %v2936_v33 }
 0x8b5   : > { %v1854_v30 = vsel %vm1535_vm5, %v1852_v28, %v1842_v16  ;;  %vm2239_vm5 = vcmp.ge.s32.totalorder %v809_v17, 64 }
 0x8b6   : > { %v1860_v56 = vmul.f32 %v1854_v30, %v4124_v31  ;;  %v1858_v55 = vmul.f32 %v1854_v30, %v4116_v14  ;;  %v1862_v34 = vmul.f32 %v1854_v30, %v4122_v23  ;;  %v1866_v36 = vmul.f32 %v1854_v30, %v4131_v8 }
 0x8b7   : > { %v1864_v31 = vmul.f32 %v1854_v30, %v4133_v12  ;;  %v1865_v14 = vmul.f32 %v1853_v52, %v4131_v8  ;;  %v1870_v45 = vmul.f32 %v1854_v30, %v4143_v47  ;;  %v1868_v23 = vmul.f32 %v1854_v30, %v4145_v58 }
 0x8b8   : > { %v3158_v29 = vpack.i.bf16 %v1860_v56, %v1859_v2  ;;  %v3153_v40 = vpack.i.bf16 %v1858_v55, %v1857_v22  ;;  %v3163_v10 = vpack.i.bf16 %v1862_v34, %v1861_v21  ;;  %v1856_v8 = vmul.f32 %v1854_v30, %v4155_v50 }
 0x8b9   : > { %v3178_v54 = vpack.i.bf16 %v1866_v36, %v1865_v14  ;;  %v3173_v43 = vpack.i.bf16 %v1864_v31, %v1863_v42  ;;  %v3188_v41 = vpack.i.bf16 %v1870_v45, %v1869_v46  ;;  %v3183_v38 = vpack.i.bf16 %v1868_v23, %v1867_v37 }
 0x8ba   : > { %3159 = vrot.lane.b32.xlu1 %v3158_v29, %s3336_s4  ;;  %3154 = vrot.lane.b32.xlu0 %v3153_v40, %s4582_s24  ;;  %s4589_s24 = smov 46   ;;  %v1855_v12 = vmul.f32 %v1853_v52, %v4155_v50 }
 0x8bc   : > { %v3193_v48 = vpack.i.bf16 %v1856_v8, %v1855_v12  ;;  %v1919_v8 = vld [vmem:[%s4591_s6] sm:$0xff]  ;;  %v1922_v12 = vld [vmem:[%s4591_s6 + $0x18] sm:$0xff] }
 0x8be   : > { %3169 = vrot.lane.b32.xlu1 %v3168_v35, %s3335_s25  ;;  %3164 = vrot.lane.b32.xlu0 %v3163_v10, %s3337_s10  ;;  %s4590_s25 = smov 47   ;;  %s3345_s10 = smov 32  }
 0x8c2   : > { %3179 = vrot.lane.b32.xlu1 %v3178_v54, %s3340_s5  ;;  %3174 = vrot.lane.b32.xlu0 %v3173_v43, %s3339_s0  ;;  %s4594_s0 = smov 16  }
 0x8c6   : > { %3189 = vrot.lane.b32.xlu1 %v3188_v41, %s4589_s24  ;;  %3184 = vrot.lane.b32.xlu0 %v3183_v38, %s4590_s25  ;;  %s3346_s24 = smov 80  }
 0x8ca   : > { %3194 = vrot.lane.b32.xlu0 %v3193_v48, %s3343_s26  ;;  %v1921_v48 = vld [vmem:[%s4591_s6 + $0x10] sm:$0xff] }
 0x92c   : > { %v3160_v49 = vpop.permute.xlu1 %3159  ;;  %v3155_v57 = vpop.permute.xlu0 %3154 }
 0x92d   : > { %3199 = vrot.lane.b32.xlu1 %v3155_v57, %s3343_s26  ;;  %3204 = vrot.lane.b32.xlu0 %v3160_v49, %s3343_s26  ;;  %v2078_v49 = vld [vmem:[%s4522_s17 + $0x20] sm:$0xff]  ;;  %v2079_v57 = vld [vmem:[%s4522_s17 + $0x28] sm:$0xff] }
 0x930   : > { %v3170_v18 = vpop.permute.xlu1 %3169  ;;  %v3165_v19 = vpop.permute.xlu0 %3164 }
 0x931   : > { %3209 = vrot.lane.b32.xlu1 %v3165_v19, %s3343_s26  ;;  %3214 = vrot.lane.b32.xlu0 %v3170_v18, %s3343_s26  ;;  %v2940_v18 = vpack.c.bf16 %v2079_v57, %v2078_v49  ;;  %v2080_v19 = vld [vmem:[%s4522_s17 + $0x30] sm:$0xff] }
 0x933   : > { %2941 = vmatprep.subr.bf16.mxu0 %v2940_v18 }
 0x934   : > { %v3180_v47 = vpop.permute.xlu1 %3179  ;;  %v3175_v58 = vpop.permute.xlu0 %3174  ;;  %2943 = vmatpush3.bf16.msra.mxu0 %v2940_v18 }
 0x935   : > { %3219 = vrot.lane.b32.xlu1 %v3175_v58, %s3343_s26  ;;  %3224 = vrot.lane.b32.xlu0 %v3180_v47, %s3343_s26  ;;  %v2081_v47 = vld [vmem:[%s4522_s17 + $0x38] sm:$0xff] }
 0x936   : > { %v2944_v58 = vpack.c.bf16 %v2081_v47, %v2080_v19  ;;  %v2376_v19 = vld [vmem:[%s4523_s18 + $0xb0] sm:$0xff]  ;;  %v2377_v47 = vld [vmem:[%s4523_s18 + $0xb8] sm:$0xff] }
 0x938   : > { %v3190_v27 = vpop.permute.xlu1 %3189  ;;  %v3185_v60 = vpop.permute.xlu0 %3184  ;;  %2945 = vmatprep.subr.bf16.mxu0 %v2944_v58 }
 0x939   : > { %3229 = vrot.lane.b32.xlu1 %v3185_v60, %s3343_s26  ;;  %3234 = vrot.lane.b32.xlu0 %v3190_v27, %s3343_s26 }
 0x93a   : > { %2947 = vmatpush3.bf16.msra.mxu0 %v2944_v58 }
 0x93b   : > { %2980 = vmatprep.subr.bf16.mxu0 %v3338_v39 }
 0x93c   : > { %v3195_v50 = vpop.permute.xlu0 %3194 }
 0x93d   : > { %v3197_v51 = vunpack.i.h.bf16 %v3195_v50  ;;  %v3196_v44 = vunpack.i.l.bf16 %v3195_v50  ;;  %1927 = vperm.xlu1 %3067, %v1923_v63   ;;  %1932 = vperm.xlu0 %3066, %v1924_v4  }
 0x93f   : > { %v2906_v5 = vpack.c.bf16 %v3197_v51, %v3196_v44 }
 0x941   : > { %2907 = vmatpush1.bf16.msra.mxu1 %v2906_v5 }
 0x942   : > { %2908 = vmatprep.subr.bf16.mxu1 %v3338_v39 }
 0x99f   : > { %v3200_v15 = vpop.permute.xlu1 %3199  ;;  %v3205_v16 = vpop.permute.xlu0 %3204 }
 0x9a0   : > { %v3202_v32 = vunpack.i.h.bf16 %v3200_v15  ;;  %v3201_v7 = vunpack.i.l.bf16 %v3200_v15  ;;  %v3207_v61 = vunpack.i.h.bf16 %v3205_v16  ;;  %v3206_v11 = vunpack.i.l.bf16 %v3205_v16  ;;  %v2355_v16 = vld [vmem:[%s4523_s18 + $0x8] sm:$0xff] }
 0x9a2   : > { %v2909_v9 = vpack.c.bf16 %v3202_v32, %v3201_v7  ;;  %v2912_v28 = vpack.c.bf16 %v3207_v61, %v3206_v11 }
 0x9a3   : > { %v3210_v52 = vpop.permute.xlu1 %3209  ;;  %v3215_v56 = vpop.permute.xlu0 %3214 }
 0x9a4   : > { %2910 = vmatpush1.bf16.msra.mxu1 %v2909_v9  ;;  %v3212_v30 = vunpack.i.h.bf16 %v3210_v52  ;;  %v3211_v2 = vunpack.i.l.bf16 %v3210_v52  ;;  %v3217_v55 = vunpack.i.h.bf16 %v3215_v56  ;;  %v3216_v29 = vunpack.i.l.bf16 %v3215_v56  ;;  %v2372_v52 = vld [vmem:[%s4523_s18 + $0x90] sm:$0xff] }
 0x9a5   : > { %2911 = vmatprep.subr.bf16.mxu1 %v3338_v39 }
 0x9a6   : > { %v2915_v22 = vpack.c.bf16 %v3212_v30, %v3211_v2  ;;  %v2918_v34 = vpack.c.bf16 %v3217_v55, %v3216_v29  ;;  %v2356_v55 = vld [vmem:[%s4523_s18 + $0x10] sm:$0xff]  ;;  %v2357_v29 = vld [vmem:[%s4523_s18 + $0x18] sm:$0xff] }
 0x9a7   : > { %v3220_v40 = vpop.permute.xlu1 %3219  ;;  %v3225_v10 = vpop.permute.xlu0 %3224 }
 0x9a8   : > { %2913 = vmatpush1.bf16.msra.mxu1 %v2912_v28  ;;  %v3222_v21 = vunpack.i.h.bf16 %v3220_v40  ;;  %v3221_v35 = vunpack.i.l.bf16 %v3220_v40  ;;  %v3227_v31 = vunpack.i.h.bf16 %v3225_v10  ;;  %v3226_v14 = vunpack.i.l.bf16 %v3225_v10  ;;  %v2373_v28 = vld [vmem:[%s4523_s18 + $0x98] sm:$0xff] }
 0x9a9   : > { %2914 = vmatprep.subr.bf16.mxu1 %v3338_v39 }
 0x9aa   : > { %v2921_v36 = vpack.c.bf16 %v3222_v21, %v3221_v35  ;;  %v2924_v54 = vpack.c.bf16 %v3227_v31, %v3226_v14  ;;  %v2954_v21 = vpack.c.bf16 %v2357_v29, %v2356_v55 }
 0x9ab   : > { %v3230_v42 = vpop.permute.xlu1 %3229  ;;  %v3235_v23 = vpop.permute.xlu0 %3234 }
 0x9ac   : > { %2916 = vmatpush1.bf16.msra.mxu1 %v2915_v22  ;;  %v3232_v43 = vunpack.i.h.bf16 %v3230_v42  ;;  %v3231_v45 = vunpack.i.l.bf16 %v3230_v42  ;;  %v3237_v37 = vunpack.i.h.bf16 %v3235_v23  ;;  %v3236_v41 = vunpack.i.l.bf16 %v3235_v23 }
 0x9ad   : > { %2917 = vmatprep.subr.bf16.mxu1 %v3338_v39  ;;  %v2952_v22 = vpack.c.bf16 %v2373_v28, %v2372_v52 }
 0x9ae   : > { %v2927_v46 = vpack.c.bf16 %v3232_v43, %v3231_v45  ;;  %v2930_v38 = vpack.c.bf16 %v3237_v37, %v3236_v41  ;;  %v2375_v43 = vld [vmem:[%s4523_s18 + $0xa8] sm:$0xff]  ;;  %v2358_v37 = vld [vmem:[%s4523_s18 + $0x20] sm:$0xff] }
 0x9af   : > { %v2359_v41 = vld [vmem:[%s4523_s18 + $0x28] sm:$0xff] }
 0x9b0   : > { %2919 = vmatpush1.bf16.msra.mxu1 %v2918_v34  ;;  %v2958_v18 = vpack.c.bf16 %v2359_v41, %v2358_v37 }
 0x9b1   : > { %2920 = vmatprep.subr.bf16.mxu1 %v3338_v39 }
 0x9b4   : > { %2922 = vmatpush1.bf16.msra.mxu1 %v2921_v36 }
 0x9b5   : > { %2923 = vmatprep.subr.bf16.mxu1 %v3338_v39 }
 0x9b8   : > { %2925 = vmatpush1.bf16.msra.mxu1 %v2924_v54  ;;  %v2374_v54 = vld [vmem:[%s4523_s18 + $0xa0] sm:$0xff] }
 0x9b9   : > { %2926 = vmatprep.subr.bf16.mxu1 %v3338_v39  ;;  %v2956_v49 = vpack.c.bf16 %v2375_v43, %v2374_v54 }
 0x9bc   : > { %2928 = vmatpush1.bf16.msra.mxu1 %v2927_v46  ;;  %v1928_v27 = vpop.permute.xlu1 %1927  ;;  %v1933_v63 = vpop.permute.xlu0 %1932 }
 0x9bd   : > { %2929 = vmatprep.subr.bf16.mxu1 %v3338_v39  ;;  %v2370_v39 = vld [vmem:[%s4523_s18 + $0x80] sm:$0xff] }
 0x9be   : > { %v2948_v15 = vpack.c.bf16 %v2371_v6, %v2370_v39 }
 0x9c0   : > { %2931 = vmatpush1.bf16.msra.mxu1 %v2930_v38 }
 0x9c1   : > { %2949 = vmatprep.subr.bf16.mxu1 %v2948_v15 }
 0x9c3   : > { %2062 = vmatmul.mubr.f32.vlgmr.msra.gmra.mrb[8].mxu1 %v1919_v8 }
 0x9c4   : > { %2673 = vmatprep.mubr.msk.f32.mxu1 %vm1236_vm1, %v1922_v12 }
 0x9c7   : > { %2067 = vmatmul.mubr.f32.gmra.mrb[10].mxu1 %v1921_v48 }
 0xa96   : > { %v2063_v60 = vpop.f32.mrb[8].mxu1 }
 0xa97   : > { %v2064_v50 = vadd.f32 %v2063_v60, %v1928_v27  ;;  %v2065_v51 = vpop.f32.mrb[9].mxu1  ;;  %v2360_v27 = vld [vmem:[%s4523_s18 + $0x30] sm:$0xff]  ;;  %v2361_v60 = vld [vmem:[%s4523_s18 + $0x38] sm:$0xff] }
 0xa98   : > { %v2960_v51 = vpack.c.bf16 %v2377_v47, %v2376_v19 }
 0xa99   : > { %v2072_v44 = vadd.f32 %v4064_v1, %v2064_v50  ;;  %v2181_v1 = vsub.s32 %v2178_v62, %v3582_v20  ;;  %v2381_v62 = vld [vmem:[%s4523_s18 + $0xd8] sm:$0xff] }
 0xa9a   : > { %v2068_v4 = vpop.f32.mrb[10].mxu1  ;;  %v2968_v6 = vpack.c.bf16 %v2381_v62, %v2380_v53 }
 0xa9b   : > { %v2069_v5 = vadd.f32 %v2068_v4, %v1933_v63  ;;  %v2070_v3 = vpop.f32.mrb[11].mxu1  ;;  %2784 = vmatprep.mubr.msk.f32.mxu0 %vm2082_vm8, %v2072_v44  ;;  %v2962_v44 = vpack.c.bf16 %v2361_v60, %v2360_v27  ;;  %v2378_v63 = vld [vmem:[%s4523_s18 + $0xc0] sm:$0xff]  ;;  %v2379_v4 = vld [vmem:[%s4523_s18 + $0xc8] sm:$0xff] }
 0xa9c   : > { %v2362_v3 = vld [vmem:[%s4523_s18 + $0x40] sm:$0xff] }
 0xa9d   : > { %v2073_v13 = vadd.f32 %v4068_v59, %v2069_v5  ;;  %v2354_v59 = vld [vmem:[%s4523_s18] sm:$0xff]  ;;  %v2964_v5 = vpack.c.bf16 %v2379_v4, %v2378_v63 }
 0xa9e   : > { %v2950_v61 = vpack.c.bf16 %v2355_v16, %v2354_v59  ;;  %v2382_v16 = vld [vmem:[%s4523_s18 + $0xe0] sm:$0xff] }
 0xa9f   : > { %2785 = vmatmul.mubr.msk.f32.vlgmr.msra.gmra.mrb[10].mxu0 %vm2082_vm8, %v2073_v13  ;;  %v2363_v13 = vld [vmem:[%s4523_s18 + $0x48] sm:$0xff]  ;;  %vm2241_vm8 = vmand %vm2239_vm5, %vm2240_vm6  ;;  %vm2547_vm5 = vcmask 57344  }
 0xaa0   : > { %2951 = vmatpush3.bf16.msra.mxu1 %v2950_v61  ;;  %v2966_v26 = vpack.c.bf16 %v2363_v13, %v2362_v3  ;;  %v2367_v61 = vld [vmem:[%s4523_s18 + $0x68] sm:$0xff]  ;;  %2791 = vmatprep.mubr.msk.f32.mxu0 %vm3348_vm3, %v3318_v0 }
 0xaa1   : > { %2953 = vmatprep.subr.bf16.mxu1 %v2952_v22 }
 0xaa4   : > { %2955 = vmatpush3.bf16.msra.mxu1 %v2954_v21 }
 0xaa5   : > { %2957 = vmatprep.subr.bf16.mxu1 %v2956_v49 }
 0xaa8   : > { %2959 = vmatpush3.bf16.msra.mxu1 %v2958_v18 }
 0xaa9   : > { %2961 = vmatprep.subr.bf16.mxu1 %v2960_v51 }
 0xaac   : > { %2963 = vmatpush3.bf16.msra.mxu1 %v2962_v44 }
 0xaad   : > { %2965 = vmatprep.subr.bf16.mxu1 %v2964_v5 }
 0xab0   : > { %2967 = vmatpush3.bf16.msra.mxu1 %v2966_v26 }
 0xab1   : > { %2969 = vmatprep.subr.bf16.mxu1 %v2968_v6 }
 0xb72   : > { %v2786_v33 = vpop.f32.mrb[10].mxu0 }
 0xb73   : > { %vm2165_vm9 = vcmp.ge.f32.partialorder %v2786_v33, 0.0  ;;  %v2167_v32 = vmul.f32 0.1, %v2786_v33  ;;  %v2155_v7 = vpop.f32.mrb[11].mxu0 }
 0xb74   : > { %vm2164_vm11 = vcmp.ge.f32.partialorder %v2155_v7, 0.0  ;;  %v2166_v20 = vmul.f32 0.1, %v2155_v7 }
 0xb75   : > { %v2169_v11 = vsel %vm2165_vm9, %v2786_v33, %v2167_v32  ;;  %v2365_v33 = vld [vmem:[%s4523_s18 + $0x58] sm:$0xff]  ;;  %v2383_v32 = vld [vmem:[%s4523_s18 + $0xe8] sm:$0xff]  ;;  %vm2254_vm9 = vcmp.ge.s32.totalorder %v809_v17, 80 }
 0xb76   : > { %v2282_v30 = vrot.slane %v2169_v11, %v2181_v1  ;;  %v2312_v2 = vcombine.high %v2169_v11, %v2169_v11  ;;  %v2168_v56 = vsel %vm2164_vm11, %v2155_v7, %v2166_v20  ;;  %2274 = vst.msk [vmem:[#allocation2 + $0x1] sm:$0x1] %vm4309_vm10, %v2169_v11  ;;  %v2366_v7 = vld [vmem:[%s4523_s18 + $0x60] sm:$0xff]  ;;  %v2972_v9 = vpack.c.bf16 %v2383_v32, %v2382_v16  ;;  %v2384_v20 = vld [vmem:[%s4523_s18 + $0xf0] sm:$0xff]  ;;  %v2385_v11 = vld [vmem:[%s4523_s18 + $0xf8] sm:$0xff] }
 0xb77   : > { %v2182_v40 = vrot.slane %v2168_v56, %v2181_v1  ;;  %v2221_v34 = vcombine.high %v2168_v56, %v2168_v56  ;;  %2174 = vst.msk [vmem:[#allocation2] sm:$0x1] %vm4309_vm10, %v2168_v56  ;;  %v2974_v52 = vpack.c.bf16 %v2367_v61, %v2366_v7  ;;  %v2976_v28 = vpack.c.bf16 %v2385_v11, %v2384_v20 }
 0xb78   : > { %v2283_v35 = vcombine.high %v2282_v30, %v2282_v30  ;;  %v2290_v10 = vrot.slane %v2282_v30, %v2181_v1  ;;  %v2319_v36 = vrot.slane %v2312_v2, %v2181_v1  ;;  %v2368_v30 = vld [vmem:[%s4523_s18 + $0x70] sm:$0xff]  ;;  %v2369_v2 = vld [vmem:[%s4523_s18 + $0x78] sm:$0xff]  ;;  %vm2255_vm10 = vcmp.lt.s32.totalorder %v809_v17, 96 }
 0xb79   : > { %v2183_v31 = vcombine.high %v2182_v40, %v2182_v40  ;;  %v2190_v14 = vrot.slane %v2182_v40, %v2181_v1  ;;  %v2228_v42 = vrot.slane %v2221_v34, %v2181_v1  ;;  %v2978_v55 = vpack.c.bf16 %v2369_v2, %v2368_v30  ;;  %vm2256_vm11 = vmand %vm2254_vm9, %vm2255_vm10 }
 0xb7a   : > { %v2297_v45 = vrot.slane %v2283_v35, %v2181_v1  ;;  %v4335_v23 = vrot.slane %v2319_v36, %v2181_v1  ;;  %v2331_v46 = vcombine.high %v2319_v36, %v2319_v36  ;;  %v2302_v58 = vcombine.high %v2290_v10, %v2290_v10 }
 0xb7b   : > { %v2197_v38 = vrot.slane %v2183_v31, %v2181_v1  ;;  %v4343_v8 = vrot.slane %v2228_v42, %v2181_v1  ;;  %v2243_v12 = vcombine.high %v2228_v42, %v2228_v42  ;;  %v2205_v50 = vcombine.high %v2190_v14, %v2190_v14 }
 0xb7c   : > { %2298 = vrot.lane.b32.xlu0 %v2297_v45, %s4594_s0  ;;  %v4346_v48 = vrot.slane %v2331_v46, %v2181_v1  ;;  %v2307_v39 = vcombine.high %v2297_v45, %v2297_v45  ;;  %v2343_v56 = vcombine.high %v4335_v23, %v4335_v23 }
 0xb7d   : > { %2198 = vrot.lane.b32.xlu1 %v2197_v38, %s4594_s0  ;;  %v4349_v57 = vrot.slane %v2243_v12, %v2181_v1  ;;  %v2364_v1 = vld [vmem:[%s4523_s18 + $0x50] sm:$0xff]  ;;  %v2213_v15 = vcombine.high %v2197_v38, %v2197_v38  ;;  %v2258_v22 = vcombine.high %v4343_v8, %v4343_v8  ;;  %s3347_s0 = smov 96  }
 0xb7e   : > { %v2970_v59 = vpack.c.bf16 %v2365_v33, %v2364_v1  ;;  %v2348_v29 = vcombine.high %v4346_v48, %v4346_v48 }
 0xb7f   : > { %v2266_v40 = vcombine.high %v4349_v57, %v4349_v57 }
 0xb80   : > { %2303 = vrot.lane.b32.xlu0 %v2302_v58, %s3345_s10  ;;  %2971 = vmatpush3.bf16.msra.mxu1 %v2970_v59 }
 0xb81   : > { %2206 = vrot.lane.b32.xlu1 %v2205_v50, %s3345_s10  ;;  %2973 = vmatprep.subr.bf16.mxu1 %v2972_v9 }
 0xb84   : > { %2327 = vrot.lane.b32.xlu0 %v4335_v23, %s4588_s28  ;;  %2975 = vmatpush3.bf16.msra.mxu1 %v2974_v52 }
 0xb85   : > { %2236 = vrot.lane.b32.xlu1 %v4343_v8, %s4588_s28  ;;  %2977 = vmatprep.subr.bf16.mxu1 %v2976_v28 }
 0xb88   : > { %2308 = vrot.lane.b32.xlu0 %v2307_v39, %s3340_s5  ;;  %2979 = vmatpush3.bf16.msra.mxu1 %v2978_v55 }
 0xb89   : > { %2214 = vrot.lane.b32.xlu1 %v2213_v15, %s3340_s5  ;;  %s690_s5 = sand.u32 1, %s3307_s23  }
 0xb8a   : > { %s2550_s7 = scalar_lea.sflag [#allocation6], %s690_s5 }
 0xb8c   : > { %2339 = vrot.lane.b32.xlu0 %v4346_v48, %s3346_s24 }
 0xb8d   : > { %2251 = vrot.lane.b32.xlu1 %v4349_v57, %s3346_s24  ;;  %s704_s24 = sld [smem:[#allocation4 + %s3489_s14]] }
 0xb90   : > { %2344 = vrot.lane.b32.xlu0 %v2343_v56, %s3347_s0 }
 0xb91   : > { %2259 = vrot.lane.b32.xlu1 %v2258_v22, %s3347_s0  ;;  %s2677_s0 = sshll.u32 %s3489_s14, 4 }
 0xb93   : > { %p705_p3 = scmp.lt.s32.totalorder %s704_s24, 2 }
 0xb94   : > { %2349 = vrot.lane.b32.xlu0 %v2348_v29, %s4584_s29 }
 0xb95   : > { %2267 = vrot.lane.b32.xlu1 %v2266_v40, %s4584_s29  ;;  %s697_s29 = sld [smem:[#allocation4 + %s3489_s14]]  ;;  %s4606_s24 = smov (!%p705_p3, %s704_s24), 2 }
 0xb96   : > { %s707_s10 = scalar_lea.vmem %s4526_s21, %s4606_s24  ;;  %s3349_s14 = smov [#allocation5]  }
 0xb97   : > { %v2473_v0 = vld [vmem:[%s707_s10] sm:$0x1]  ;;  %s3255_s24 = sshll.u32 %s3349_s14, 4  ;;  %s3256_s24 = int_to_ptr.vmem [resolvable:$false] %s3255_s24 }
 0xb98   : > { %s3257_s25 = scalar_lea.vmem %s3256_s24, 32 }
 0xb9b   : > { %p698_p2 = scmp.lt.s32.totalorder %s697_s29, 2 }
 0xb9d   : > { %s4604_s29 = smov (!%p698_p2, %s697_s29), 2 }
 0xb9e   : > { %s2681_s30 = sshll.u32 %s4604_s29, 4  ;;  %s691_s29 = scalar_lea.vmem [#allocation5], %s690_s5 }
 0xb9f   : > { %s702_s26 = scalar_lea.vmem %s4525_s20, %s2681_s30  ;;  %s2562_s30 = sshll.u32 %s691_s29, 4  ;;  %s4465_s30 = int_to_ptr.vmem [resolvable:$true] %s2562_s30 }
 0xba0   : > { %v2471_v17 = vld [vmem:[%s702_s26] sm:$0xff]  ;;  %v2472_v12 = vld [vmem:[%s702_s26 + $0x8] sm:$0xff]  ;;  %s4463_s26 = scalar_lea.hbm %s4527_s22, %s2677_s0  ;;  %s3251_s28 = scalar_lea.vmem %s4465_s30, 16 }
 0xba1   : > { %v2981_v48 = vpack.c.bf16 %v2472_v12, %v2471_v17  ;;  %p3252_p4 = scmp.ne.s32.totalorder %s4465_s30, %s3251_s28  ;;  %p3258_p7 = scmp.lt.s32.totalorder %s4465_s30, %s3256_s24 }
 0xba2   : > { %p3259_p8 = scmp.lt.s32.totalorder %s3257_s25, %s3251_s28 }
 0xba3   : > { %2982 = vmatpush3.bf16.msra.mxu0 %v2981_v48  ;;  %p3253_p5 = pnand %p3252_p4, %p3506_p10 }
 0xba4   : > { %p3260_p9 = por %p3259_p8, %p3258_p7 }
 0xba5   : > { %p3254_p6 = pneg %p3253_p5 }
 0xba7   : > { %p3261_p12 = pnand %p3260_p9, %p3254_p6 }
 0xbee   : > { %v2299_v34 = vpop.permute.xlu0 %2298 }
 0xbef   : > { %2301 = vst.msk [vmem:[#allocation2 + $0x1] sm:$0x1] %vm2203_vm14, %v2299_v34  ;;  %v2199_v21 = vpop.permute.xlu1 %2198 }
 0xbf0   : > { %2204 = vst.msk [vmem:[#allocation2] sm:$0x1] %vm2203_vm14, %v2199_v21  ;;  %vm2264_vm14 = vmand %vm2262_vm12, %vm2263_vm13 }
 0xbf2   : > { %v2304_v35 = vpop.permute.xlu0 %2303 }
 0xbf3   : > { %2306 = vst.msk [vmem:[#allocation2 + $0x1] sm:$0x1] %vm2211_vm2, %v2304_v35  ;;  %v2207_v10 = vpop.permute.xlu1 %2206 }
 0xbf4   : > { %2212 = vst.msk [vmem:[#allocation2] sm:$0x1] %vm2211_vm2, %v2207_v10  ;;  %vm2272_vm2 = vmand %vm2270_vm15, %vm2271_vm0 }
 0xbf6   : > { %v2328_v36 = vpop.permute.xlu0 %2327 }
 0xbf7   : > { %v2237_v31 = vpop.permute.xlu1 %2236 }
 0xbfa   : > { %v2309_v14 = vpop.permute.xlu0 %2308 }
 0xbfb   : > { %2311 = vst.msk [vmem:[#allocation2 + $0x1] sm:$0x1] %vm2219_vm7, %v2309_v14  ;;  %v2215_v42 = vpop.permute.xlu1 %2214 }
 0xbfc   : > { %2220 = vst.msk [vmem:[#allocation2] sm:$0x1] %vm2219_vm7, %v2215_v42 }
 0xbfd   : > { %2330 = vst.msk [vmem:[#allocation2 + $0x1] sm:$0x1] %vm2241_vm8, %v2328_v36  ;;  %2242 = vst.msk [vmem:[#allocation2] sm:$0x1] %vm2241_vm8, %v2237_v31 }
 0xbfe   : > { %v2340_v54 = vpop.permute.xlu0 %2339 }
 0xbff   : > { %2342 = vst.msk [vmem:[#allocation2 + $0x1] sm:$0x1] %vm2256_vm11, %v2340_v54  ;;  %v2252_v43 = vpop.permute.xlu1 %2251 }
 0xc00   : > { %2257 = vst.msk [vmem:[#allocation2] sm:$0x1] %vm2256_vm11, %v2252_v43 }
 0xc02   : > { %v2345_v45 = vpop.permute.xlu0 %2344 }
 0xc03   : > { %2347 = vst.msk [vmem:[#allocation2 + $0x1] sm:$0x1] %vm2264_vm14, %v2345_v45  ;;  %v2260_v23 = vpop.permute.xlu1 %2259 }
 0xc04   : > { %2265 = vst.msk [vmem:[#allocation2] sm:$0x1] %vm2264_vm14, %v2260_v23 }
 0xc06   : > { %v2350_v46 = vpop.permute.xlu0 %2349 }
 0xc07   : > { %2352 = vst.msk [vmem:[#allocation2 + $0x1] sm:$0x1] %vm2272_vm2, %v2350_v46  ;;  %v2268_v37 = vpop.permute.xlu1 %2267 }
 0xc08   : > { %2273 = vst.msk [vmem:[#allocation2] sm:$0x1] %vm2272_vm2, %v2268_v37 }
 0xc0f   : > { %v2353_v41 = vld [vmem:[#allocation2] sm:$0x3] }
 0xc10   : > { %v2391_v38 = vrot.slane %v2353_v41, %v3588_v24  ;;  %v2395_v8 = vrot.slane %v2353_v41, %v3591_v25  ;;  %v2386_v25 = vld [vmem:[%s4524_s19] sm:$0x1] }
 0xc12   : > { %2462 = vmatprep.mubr.f32.mxu1 %v2395_v8 }
 0xc13   : > { %2463 = vmatmul.mubr.f32.vlgmr.msra.gmra.mrb[12].mxu1 %v2391_v38 }
 0xce6   : > { %v2762_v24 = vpop.f32.mrb[12].mxu1 }
 0xce7   : > { %v2763_v49 = vpop.f32.mrb[13].mxu1 }
 0xce8   : > { %v2764_v57 = vadd.f32 %v2763_v49, %v2762_v24 }
 0xcea   : > { %v2465_v18 = vadd.f32 %v2764_v57, %v2386_v25 }
 0xcec   : > { %vm2468_vm4 = vcmp.ge.f32.partialorder %v2465_v18, 0.0  ;;  %v2469_v19 = vmul.f32 0.2, %v2465_v18 }
 0xcee   : > { %v2470_v47 = vsel %vm2468_vm4, %v2465_v18, %v2469_v19 }
 0xcef   : > { %2792 = vmatmul.mubr.msk.f32.vlgmr.msra.gmra.mrb[12].mxu0 %vm1236_vm1, %v2470_v47 }
 0xdc2   : > { %v2543_v58 = vpop.f32.mrb[12].mxu0 }
 0xdc3   : > { %v2544_v27 = vadd.f32 %v2543_v58, %v2473_v0  ;;  %v2793_v60 = vpop.f32.mrb[13].mxu0 }
 0xdc5   : > { %2548 = vst.msk [vmem:[%s691_s29] sm:$0x1] %vm2547_vm5, %v2544_v27 }
 0xdc6   : > { %3264 = shalt.err (!%p3261_p12)
}
 0xdc7   : > { %s3265_s5 = scalar_lea.hbm %s4463_s26, 16  ;;  %s3269_s0 = scalar_lea.hbm %s4527_s22, 32 }
 0xdc8   : > { %p3266_p13 = scmp.ne.s32.totalorder %s4463_s26, %s3265_s5  ;;  %p3270_p2 = scmp.lt.u32.totalorder %s4463_s26, %s4527_s22 }
 0xdc9   : > { %p3271_p3 = scmp.lt.u32.totalorder %s3269_s0, %s3265_s5  ;;  %p3273_p5 = scmp.lt.u32.totalorder %s3265_s5, %s4463_s26 }
 0xdca   : > { %p3267_p0 = pnand %p3266_p13, %p3506_p10 }
 0xdcb   : > { %p3272_p4 = por %p3271_p3, %p3270_p2 }
 0xdcc   : > { %p3268_p1 = pneg %p3267_p0 }
 0xdcd   : > { %p3274_p6 = por %p3273_p5, %p3272_p4 }
 0xdcf   : > { %p3275_p7 = pnand %p3274_p6, %p3268_p1 }
 0xdd1   : > { %3278 = shalt.err (!%p3275_p7)
}
 0xdd2   : > { %2995 = dma.vmem_to_hbm [thread:$0]  (%p3506_p10), %s4465_s30, 16, %s4463_s26, %s2550_s7  }
 0xdd3 PF: > { %s4595_s2 = sld [smem:[#allocation11_spill]]  ;;  %s4596_s28 = sld [smem:[#allocation9_spill]] }
 0xdd9   : > { %p3001_p8 = scmp.ge.s32.totalorder %s4595_s2, 2  ;;  %s2574_s24 = sand.u32 1, %s4596_s28  }
 0xdda   : > { %s2575_s25 = scalar_lea.sflag [#allocation6], %s2574_s24 }
 0xddb   : > { %p2998_p9 = pnand %p3001_p8, %p3510_p11 }
 0xddd   : > { %3298 = dma.done.wait (!%p2998_p9), %s2575_s25, 16  }
 0xdde   : > { %3300 = vsyncadd (!%p2998_p9), %s2575_s25, 4294967280  ;;  %s4598_s5 = sld [smem:[#allocation12_spill]]  ;;  %s4599_s4 = sld [smem:[#allocation10_spill]] }
 0xddf   : > { %s4600_s1 = sld [smem:[#allocation13_spill]]  ;;  %s4601_s0 = smov %s3307_s23 }
 0xde4   : > { %p38_p12 = scmp.ge.s32.totalorder %s4598_s5, 4   ;;  %s4602_s23 = smov %s4599_s4 }
 0xde6   :  { %40 = sbr.rel (!%p38_p12) target bundleno = 27 (0x1b), region = 152 }
 0xded   :  { %2579 = vsyncpa [#allocation6], 1 }
 0xdee   :  { %2581 = vsyncpa [#allocation6 + $0x1], 1 }

</bundles_post_ra>
